<compile_context>
chip_gen: v5e
topology: v5e:2x2
jax: 0.10.0
libtpu: 0.0.40
codegen_flags: <defaults>
</compile_context>

<pallas_src>
import functools

import jax
import jax.numpy as jnp
from jax import lax
from jax.experimental import pallas as pl
from jax.experimental.pallas import tpu as pltpu


# ----------------------------------------------------------------------------
# In-kernel helpers
# ----------------------------------------------------------------------------
def _leaky(x, slope):
    return jnp.where(x >= 0, x, slope * x)


def _conv3x3_taps(t, w_ref, *, H, W, is_left, is_right, compute_dtype):
    """3x3 conv with 1-px reflection pad, channel-major / spatially-flattened.

    t       : (C, H*W) f32 activation (lanes = flattened spatial).
    w_ref   : (9, Cout, C) per-tap weights, tap index = 3*dy + dx (pre-cast).
    is_left : (1, (H+2)*W) bool, lane is column 0 of its row.
    is_right: (1, (H+2)*W) bool, lane is column W-1 of its row.
    Returns (Cout, H*W) f32 accumulator.
    """
    C, S = t.shape
    # Vertical reflection pad in the flattened layout: prepend row 1, append row H-2.
    tp = jnp.concatenate([t[:, W:2 * W], t, t[:, S - 2 * W:S - W]], axis=1)  # (C, S+2W)
    Sp = S + 2 * W
    # Horizontal neighbours: shift by one lane; row-edge lanes fixed by select
    # so the reflection at w==0 / w==W-1 is exact (wraparound lanes are masked).
    sr = jnp.concatenate([tp[:, Sp - 1:], tp[:, :Sp - 1]], axis=1)   # value at w-1
    sl = jnp.concatenate([tp[:, 1:], tp[:, :1]], axis=1)             # value at w+1
    left = jnp.where(is_left, sl, sr)        # reflect at w == 0
    right = jnp.where(is_right, sr, sl)      # reflect at w == W-1
    variants = (left, tp, right)             # dx = 0, 1, 2  (offsets -1, 0, +1)

    cout = w_ref.shape[1]
    acc = jnp.zeros((cout, S), jnp.float32)
    # Per-tap accumulation keeps the working set at ~1x the activation (no 9x
    # im2col blow-up) while every matmul stays (Cout, C) x (C, H*W), i.e. the
    # contraction is lhs-minor / rhs-major -- no XLU transposes are introduced.
    for dy in range(3):
        for dx in range(3):
            tap = variants[dx][:, dy * W: dy * W + S].astype(compute_dtype)
            w_t = w_ref[3 * dy + dx]                               # (Cout, C)
            acc = acc + lax.dot_general(
                w_t, tap, (((1,), (0,)), ((), ())),
                preferred_element_type=jnp.float32)
    return acc


def _upblock_kernel(x1_ref, x2_ref, w1_ref, w2_ref, *rest,
                    H, W, b_tile, negative_slope, is_out, compute_dtype):
    # x1_ref : (b_tile, Cin, H*W)   skip connection (replicate-aligned, flattened)
    # x2_ref : (b_tile, Cin, H*W)   nearest-2x upsampled lower-res features
    # w1_ref : (9, Cmid, 2*Cin)     conv1 per-tap weights
    # w2_ref : (9, Cout, Cmid)      conv2 per-tap weights
    # w3_ref : (Cout, Cout)         optional pre-transposed 1x1 weights (is_out)
    # o_ref  : (b_tile, Cout, H*W)  lane-dense output (reshapes straight to NCHW)
    if is_out:
        w3_ref, o_ref = rest
    else:
        (o_ref,) = rest

    S = H * W
    Sp = S + 2 * W
    # Column masks hoisted out of the per-sample / per-conv work (no repeated
    # broadcast_in_dim inside the unrolled loops).
    col = lax.broadcasted_iota(jnp.int32, (1, Sp), 1) % W
    is_left = col == 0
    is_right = col == W - 1

    for b in range(b_tile):
        # Channel concat of the two branches happens here, never in HBM.
        x = jnp.concatenate([x1_ref[b], x2_ref[b]], axis=0)        # (2*Cin, S) f32
        h = _conv3x3_taps(x, w1_ref, H=H, W=W, is_left=is_left, is_right=is_right,
                          compute_dtype=compute_dtype)             # (Cmid, S) f32
        h = _leaky(h, negative_slope)
        y = _conv3x3_taps(h, w2_ref, H=H, W=W, is_left=is_left, is_right=is_right,
                          compute_dtype=compute_dtype)             # (Cout, S) f32
        y = _leaky(y, negative_slope)
        if is_out:  # fused 1x1 output head (bias=False, no activation)
            y = lax.dot_general(w3_ref[...], y.astype(compute_dtype),
                                (((1,), (0,)), ((), ())),
                                preferred_element_type=jnp.float32)
        o_ref[b] = y.astype(o_ref.dtype)


# ----------------------------------------------------------------------------
# Wrapper-side sizing helpers
# ----------------------------------------------------------------------------
def _pick_batch_tile(N, H, W, cin, cmid, cout, budget_bytes=4 << 20):
    """Fold several batch elements into one grid step when per-step work is tiny."""
    per_sample = (6 * 2 * cin + 4 * cmid + 2 * cout) * H * W * 4
    bt = 1
    for d in range(1, min(N, 8) + 1):
        if N % d == 0 and d * per_sample <= budget_bytes:
            bt = d
    return bt


def _vmem_limit_bytes(b_tile, cin, cmid, cout, S, compute_dtype):
    """Derive the VMEM limit from the actual tile footprint, capped per-chip."""
    itm = 2 if compute_dtype == jnp.bfloat16 else 4
    est = 4 * b_tile * 2 * cin * S * 4          # two inputs, double-buffered
    est += 2 * b_tile * cout * S * 4            # output, double-buffered
    est += b_tile * (8 * 2 * cin + 6 * cmid + 2 * cout) * S * 4   # in-kernel temporaries
    est += 2 * 9 * (cmid * 2 * cin + cout * cmid) * itm           # weights
    try:
        cap = int(pltpu.get_tpu_info().vmem_capacity_bytes)
    except Exception:
        cap = 64 * 1024 * 1024                  # conservative (v7x per-core VMEM)
    return max(32 * 1024 * 1024, min(int(0.75 * cap), 2 * est))


# ----------------------------------------------------------------------------
# Pallas wrapper
# ----------------------------------------------------------------------------
def _upblock_pallas(x1, up2, params, *, is_out, negative_slope, compute_dtype):
    N, Cin, H, W = x1.shape
    assert H >= 2 and W >= 2, "ReflectionPad2d(1) needs H, W >= 2"
    Cmid = params["w1"].shape[-1]
    Cout = params["w2"].shape[-1]
    S = H * W

    # HWIO -> per-tap (Cout, Cin) slabs, tap index = 3*dy + dx; pre-cast to the
    # MXU operand dtype so the weight DMA is also half-size in bf16 mode.
    w1 = jnp.transpose(params["w1"], (0, 1, 3, 2)).reshape(9, Cmid, 2 * Cin)
    w2 = jnp.transpose(params["w2"], (0, 1, 3, 2)).reshape(9, Cout, Cmid)
    w1 = w1.astype(compute_dtype)
    w2 = w2.astype(compute_dtype)

    # Free reshapes: NCHW is already channel-major, so flattening H,W -> H*W
    # is pure metadata (no transposes anywhere on the activation path).
    x1f = x1.reshape(N, Cin, S)
    x2f = up2.reshape(N, Cin, S)

    b_tile = _pick_batch_tile(N, H, W, Cin, Cmid, Cout)

    args = [x1f, x2f, w1, w2]
    in_specs = [
        pl.BlockSpec((b_tile, Cin, S), lambda n: (n, 0, 0)),
        pl.BlockSpec((b_tile, Cin, S), lambda n: (n, 0, 0)),
        # Constant index_maps: the pipeline skips re-fetching these blocks, so
        # weights are DMA'd only once across the whole grid.
        # TODO(synk): add pipeline_mode=pl.Buffered(1) on the weight specs to halve
        # their VMEM residency once single-buffering is supported by the default
        # pallas_call TPU pipeline.
        pl.BlockSpec((9, Cmid, 2 * Cin), lambda n: (0, 0, 0)),
        pl.BlockSpec((9, Cout, Cmid), lambda n: (0, 0, 0)),
    ]
    if is_out:
        args.append(jnp.transpose(params["w3"]).astype(compute_dtype))  # (Cout, Cout)
        in_specs.append(pl.BlockSpec((Cout, Cout), lambda n: (0, 0)))

    kernel = functools.partial(
        _upblock_kernel, H=H, W=W, b_tile=b_tile,
        negative_slope=negative_slope, is_out=is_out, compute_dtype=compute_dtype)

    out = pl.pallas_call(
        kernel,
        out_shape=jax.ShapeDtypeStruct((N, Cout, S), x1.dtype),
        grid_spec=pltpu.PrefetchScalarGridSpec(
            num_scalar_prefetch=0,
            grid=(N // b_tile,),
            in_specs=in_specs,
            out_specs=pl.BlockSpec((b_tile, Cout, S), lambda n: (n, 0, 0)),
        ),
        compiler_params=pltpu.CompilerParams(
            dimension_semantics=("parallel",),
            vmem_limit_bytes=_vmem_limit_bytes(b_tile, Cin, Cmid, Cout, S,
                                               compute_dtype),
        ),
        # TODO(synk): for large H/W/C add a row-tiled spatial grid axis (1-row real
        # halos from neighbours, reflection only at true image borders) sized for
        # v7x's 64 MiB VMEM, giving a second "parallel" axis for batch-1 inference;
        # keep each output block's lane extent a multiple of 128 when doing so.
    )(*args)
    return out.reshape(N, Cout, H, W)                      # already NCHW


# ----------------------------------------------------------------------------
# UpBlock forward (is_deconv=False path: nearest 2x upsample)
# ----------------------------------------------------------------------------
def _split_pad(off):
    # torch UpBlock: odd offsets put the extra pixel on the left/top side.
    return (off // 2 + 1, off // 2) if off % 2 else (off // 2, off // 2)


def _align_spatial_nchw(x1, up2):
    """Replicate-pad ('edge') NCHW tensors to the same spatial shape,
    mirroring the F.pad(..., 'replicate') logic in UpBlock.forward."""
    ow = up2.shape[3] - x1.shape[3]     # width offset
    oh = up2.shape[2] - x1.shape[2]     # height offset
    p1 = [(0, 0)] * 4
    p2 = [(0, 0)] * 4
    if ow >= 0:
        p1[3] = _split_pad(ow)
    else:
        p2[3] = _split_pad(-ow)
    if oh >= 0:
        p1[2] = _split_pad(oh)
    else:
        p2[2] = _split_pad(-oh)
    if any(p != (0, 0) for p in p1):
        x1 = jnp.pad(x1, p1, mode="edge")
    if any(p != (0, 0) for p in p2):
        up2 = jnp.pad(up2, p2, mode="edge")
    return x1, up2


def upblock_forward(inputs1, inputs2, params, *, is_out=False, negative_slope=0.1,
                    compute_dtype=jnp.float32):
    """UpBlock forward (is_deconv=False). inputs1/inputs2: NCHW f32 -> NCHW f32.

    compute_dtype: dtype of the MXU operands (f32 default for bit-accuracy;
    jnp.bfloat16 recommended on v5e/v6e/v7x when channel counts are MXU-bound,
    accumulation stays f32 either way).
    """
    # TODO(synk): is_deconv=True (nn.ConvTranspose2d) branch not implemented.
    N, Cin, Hh, Wh = inputs2.shape
    # UpsamplingNearest2d(scale_factor=2) in NCHW via broadcast+reshape.
    # TODO(synk): move this 2x nearest upsample inside the kernel (pass low-res x2)
    # to cut its HBM read traffic 4x; needs a safe lane-gather / strided-store path.
    up2 = jnp.broadcast_to(inputs2[:, :, :, None, :, None],
                           (N, Cin, Hh, 2, Wh, 2)).reshape(N, Cin, 2 * Hh, 2 * Wh)
    x1, up2 = _align_spatial_nchw(inputs1, up2)
    return _upblock_pallas(x1, up2, params, is_out=is_out,
                           negative_slope=negative_slope,
                           compute_dtype=compute_dtype)


# ----------------------------------------------------------------------------
# Pure-JAX reference (independent path: repeat / pad / concat / lax.conv)
# ----------------------------------------------------------------------------
def upblock_ref(inputs1, inputs2, params, *, is_out=False, slope=0.1):
    up2 = jnp.repeat(jnp.repeat(inputs2, 2, axis=2), 2, axis=3)       # NCHW
    ow = up2.shape[3] - inputs1.shape[3]
    oh = up2.shape[2] - inputs1.shape[2]

    def pads(off):
        return (off // 2 + 1, off // 2) if off % 2 else (off // 2, off // 2)

    p1 = [(0, 0)] * 4
    p2 = [(0, 0)] * 4
    if ow >= 0:
        p1[3] = pads(ow)
    else:
        p2[3] = pads(-ow)
    if oh >= 0:
        p1[2] = pads(oh)
    else:
        p2[2] = pads(-oh)
    a = jnp.pad(inputs1, p1, mode="edge")
    b = jnp.pad(up2, p2, mode="edge")

    x = jnp.concatenate([a, b], axis=1)                               # NCHW
    x = jnp.transpose(x, (0, 2, 3, 1))                                # NHWC

    def conv3(x, w):
        xp = jnp.pad(x, ((0, 0), (1, 1), (1, 1), (0, 0)), mode="reflect")
        y = lax.conv_general_dilated(xp, w, (1, 1), "VALID",
                                     dimension_numbers=("NHWC", "HWIO", "NHWC"))
        return jnp.where(y >= 0, y, slope * y)

    x = conv3(x, params["w1"])
    x = conv3(x, params["w2"])
    if is_out:
        x = jnp.einsum("nhwc,cd->nhwd", x, params["w3"])
    return jnp.transpose(x, (0, 3, 1, 2))                             # NCHW


# ----------------------------------------------------------------------------
if __name__ == "__main__":
    key = jax.random.PRNGKey(0)
    N, Cin, H, W = 2, 4, 16, 16
    Cout = 4

    k1, k2, k3, k4, k5, k6 = jax.random.split(key, 6)
    inputs1 = jax.random.normal(k1, (N, Cin, H, W), jnp.float32)
    inputs2 = jax.random.normal(k2, (N, Cin, H // 2, W // 2), jnp.float32)

    # Deterministic parameter init (PyTorch OIHW -> HWIO).
    def init_conv_w(k, cout, cin, kh, kw):
        w_oihw = jax.random.normal(k, (cout, cin, kh, kw), jnp.float32)
        w_oihw = w_oihw * (1.0 / (cin * kh * kw) ** 0.5)
        return jnp.transpose(w_oihw, (2, 3, 1, 0))

    params = {
        "w1": init_conv_w(k3, Cout, 2 * Cin, 3, 3),      # conv3x3(2*Cin -> Cout)
        "w2": init_conv_w(k4, Cout, Cout, 3, 3),         # conv3x3(Cout -> Cout)
        "w3": jnp.squeeze(init_conv_w(k5, Cout, Cout, 1, 1), (0, 1)),  # 1x1: (Cin, Cout)
    }

    fwd = jax.jit(upblock_forward,
                  static_argnames=("is_out", "negative_slope", "compute_dtype"))

    # Test 1: default UpBlock (is_out=False), matching spatial sizes, f32 MXU operands.
    out = jax.block_until_ready(fwd(inputs1, inputs2, params, is_out=False))
    ref = upblock_ref(inputs1, inputs2, params, is_out=False)
    assert out.shape == (N, Cout, H, W), out.shape
    assert jnp.allclose(out, ref, atol=1e-4, rtol=1e-4), float(jnp.abs(out - ref).max())

    # Test 2: replicate-pad size-mismatch branch (odd offsets) + fused 1x1 head.
    inputs1b = jax.random.normal(k6, (N, Cin, H - 1, W - 1), jnp.float32)
    outb = jax.block_until_ready(fwd(inputs1b, inputs2, params, is_out=True))
    refb = upblock_ref(inputs1b, inputs2, params, is_out=True)
    assert outb.shape == (N, Cout, H, W), outb.shape
    assert jnp.allclose(outb, refb, atol=1e-4, rtol=1e-4), float(jnp.abs(outb - refb).max())

    # Test 3: bf16 MXU operands (f32 accumulation) -- looser functional check.
    outc = jax.block_until_ready(
        fwd(inputs1, inputs2, params, is_out=False, compute_dtype=jnp.bfloat16))
    assert outc.shape == (N, Cout, H, W), outc.shape
    assert jnp.allclose(outc, ref, atol=1e-1, rtol=1e-1), float(jnp.abs(outc - ref).max())

    print("KERNEL_OK")
</pallas_src>

<mosaic_0001>
module attributes {stable_mosaic.version = 11 : i64} {
  func.func @_upblock_kernel(%arg0: i32, %arg1: memref<2x4x256xf32, #tpu.memory_space<vmem>>, %arg2: memref<2x4x256xf32, #tpu.memory_space<vmem>>, %arg3: memref<9x4x8xf32, #tpu.memory_space<vmem>>, %arg4: memref<9x4x4xf32, #tpu.memory_space<vmem>>, %arg5: memref<2x4x256xf32, #tpu.memory_space<vmem>>) attributes {dimension_semantics = [#tpu.dimension_semantics<parallel>], iteration_bounds = array<i64: 1>, scalar_prefetch = 0 : i64, scratch_operands = 0 : i64, tpu.core_type = #tpu.core_type<tc>, window_params = [{transform_indices = @transform_0, window_bounds = array<i64: 2, 4, 256>}, {transform_indices = @transform_1, window_bounds = array<i64: 2, 4, 256>}, {pipeline_mode = #tpu.pipeline_mode<synchronous>, transform_indices = @transform_2, window_bounds = array<i64: 9, 4, 8>}, {pipeline_mode = #tpu.pipeline_mode<synchronous>, transform_indices = @transform_3, window_bounds = array<i64: 9, 4, 4>}, {transform_indices = @transform_4, window_bounds = array<i64: 2, 4, 256>}]} {
    %0 = tpu.iota {dimensions = array<i32: 1>} : vector<1x288xi32>
    %c16_i32 = arith.constant 16 : i32
    %c0_i32 = arith.constant 0 : i32
    %1 = arith.cmpi eq, %c16_i32, %c0_i32 : i32
    %c1_i32 = arith.constant 1 : i32
    %2 = arith.select %1, %c1_i32, %c16_i32 : i32
    %3 = vector.broadcast %2 : i32 to vector<1x288xi32>
    %4 = arith.remsi %0, %3 : vector<1x288xi32>
    %c0_i32_0 = arith.constant 0 : i32
    %5 = vector.broadcast %c0_i32_0 : i32 to vector<1x288xi32>
    %6 = arith.cmpi ne, %4, %5 : vector<1x288xi32>
    %c0_i32_1 = arith.constant 0 : i32
    %7 = vector.broadcast %c0_i32_1 : i32 to vector<1x288xi32>
    %8 = arith.cmpi slt, %4, %7 : vector<1x288xi32>
    %c0_i32_2 = arith.constant 0 : i32
    %9 = arith.cmpi slt, %2, %c0_i32_2 : i32
    %10 = vector.broadcast %9 : i1 to vector<1x288xi1>
    %11 = vector.broadcast %10 : vector<1x288xi1> to vector<1x288xi1>
    %12 = arith.xori %8, %11 : vector<1x288xi1>
    %13 = arith.andi %12, %6 : vector<1x288xi1>
    %14 = vector.broadcast %2 : i32 to vector<1x288xi32>
    %15 = arith.addi %4, %14 : vector<1x288xi32>
    %16 = arith.select %13, %15, %4 : vector<1x288xi1>, vector<1x288xi32>
    %c0_i32_3 = arith.constant 0 : i32
    %17 = vector.broadcast %c0_i32_3 : i32 to vector<1x288xi32>
    %18 = arith.cmpi eq, %16, %17 : vector<1x288xi32>
    %c15_i32 = arith.constant 15 : i32
    %19 = vector.broadcast %c15_i32 : i32 to vector<1x288xi32>
    %20 = arith.cmpi eq, %16, %19 : vector<1x288xi32>
    %c0 = arith.constant 0 : index
    %c0_4 = arith.constant 0 : index
    %c0_5 = arith.constant 0 : index
    %21 = vector.load %arg1[%c0, %c0_4, %c0_5] : memref<2x4x256xf32, #tpu.memory_space<vmem>>, vector<1x4x256xf32>
    %22 = vector.shape_cast %21 : vector<1x4x256xf32> to vector<4x256xf32>
    %c0_6 = arith.constant 0 : index
    %c0_7 = arith.constant 0 : index
    %c0_8 = arith.constant 0 : index
    %23 = vector.load %arg2[%c0_6, %c0_7, %c0_8] : memref<2x4x256xf32, #tpu.memory_space<vmem>>, vector<1x4x256xf32>
    %24 = vector.shape_cast %23 : vector<1x4x256xf32> to vector<4x256xf32>
    %25 = tpu.concatenate %22, %24 in 0 : vector<4x256xf32>, vector<4x256xf32> -> vector<8x256xf32>
    %26 = vector.extract_strided_slice %25 {offsets = [0, 16], sizes = [8, 16], strides = [1, 1]} : vector<8x256xf32> to vector<8x16xf32>
    %27 = vector.extract_strided_slice %25 {offsets = [0, 224], sizes = [8, 16], strides = [1, 1]} : vector<8x256xf32> to vector<8x16xf32>
    %28 = tpu.concatenate %26, %25, %27 in 1 : vector<8x16xf32>, vector<8x256xf32>, vector<8x16xf32> -> vector<8x288xf32>
    %29 = vector.extract_strided_slice %28 {offsets = [0, 287], sizes = [8, 1], strides = [1, 1]} : vector<8x288xf32> to vector<8x1xf32>
    %30 = vector.extract_strided_slice %28 {offsets = [0, 0], sizes = [8, 287], strides = [1, 1]} : vector<8x288xf32> to vector<8x287xf32>
    %31 = tpu.concatenate %29, %30 in 1 : vector<8x1xf32>, vector<8x287xf32> -> vector<8x288xf32>
    %32 = vector.extract_strided_slice %28 {offsets = [0, 1], sizes = [8, 287], strides = [1, 1]} : vector<8x288xf32> to vector<8x287xf32>
    %33 = vector.extract_strided_slice %28 {offsets = [0, 0], sizes = [8, 1], strides = [1, 1]} : vector<8x288xf32> to vector<8x1xf32>
    %34 = tpu.concatenate %32, %33 in 1 : vector<8x287xf32>, vector<8x1xf32> -> vector<8x288xf32>
    %35 = vector.shape_cast %18 : vector<1x288xi1> to vector<1x288xi1>
    %36 = vector.broadcast %35 : vector<1x288xi1> to vector<8x288xi1>
    %37 = arith.select %36, %34, %31 : vector<8x288xi1>, vector<8x288xf32>
    %38 = vector.shape_cast %20 : vector<1x288xi1> to vector<1x288xi1>
    %39 = vector.broadcast %38 : vector<1x288xi1> to vector<8x288xi1>
    %40 = arith.select %39, %31, %34 : vector<8x288xi1>, vector<8x288xf32>
    %cst = arith.constant 0.000000e+00 : f32
    %41 = vector.broadcast %cst : f32 to vector<4x256xf32>
    %42 = vector.extract_strided_slice %37 {offsets = [0, 0], sizes = [8, 256], strides = [1, 1]} : vector<8x288xf32> to vector<8x256xf32>
    %c0_9 = arith.constant 0 : index
    %c0_10 = arith.constant 0 : index
    %c0_11 = arith.constant 0 : index
    %43 = vector.load %arg3[%c0_9, %c0_10, %c0_11] : memref<9x4x8xf32, #tpu.memory_space<vmem>>, vector<1x4x8xf32>
    %44 = vector.shape_cast %43 : vector<1x4x8xf32> to vector<4x8xf32>
    %cst_12 = arith.constant dense<0.000000e+00> : vector<4x256xf32>
    %45 = tpu.matmul %44, %42, %cst_12 {dimension_numbers = #tpu.dot_dimension_numbers<[1], [0], [0], [1], [0, 0, 1, 1], [], []>} : vector<4x8xf32>, vector<8x256xf32>, vector<4x256xf32> -> vector<4x256xf32>
    %46 = arith.addf %41, %45 : vector<4x256xf32>
    %47 = vector.extract_strided_slice %28 {offsets = [0, 0], sizes = [8, 256], strides = [1, 1]} : vector<8x288xf32> to vector<8x256xf32>
    %c1 = arith.constant 1 : index
    %c0_13 = arith.constant 0 : index
    %c0_14 = arith.constant 0 : index
    %48 = vector.load %arg3[%c1, %c0_13, %c0_14] : memref<9x4x8xf32, #tpu.memory_space<vmem>>, vector<1x4x8xf32>
    %49 = vector.shape_cast %48 : vector<1x4x8xf32> to vector<4x8xf32>
    %cst_15 = arith.constant dense<0.000000e+00> : vector<4x256xf32>
    %50 = tpu.matmul %49, %47, %cst_15 {dimension_numbers = #tpu.dot_dimension_numbers<[1], [0], [0], [1], [0, 0, 1, 1], [], []>} : vector<4x8xf32>, vector<8x256xf32>, vector<4x256xf32> -> vector<4x256xf32>
    %51 = arith.addf %46, %50 : vector<4x256xf32>
    %52 = vector.extract_strided_slice %40 {offsets = [0, 0], sizes = [8, 256], strides = [1, 1]} : vector<8x288xf32> to vector<8x256xf32>
    %c2 = arith.constant 2 : index
    %c0_16 = arith.constant 0 : index
    %c0_17 = arith.constant 0 : index
    %53 = vector.load %arg3[%c2, %c0_16, %c0_17] : memref<9x4x8xf32, #tpu.memory_space<vmem>>, vector<1x4x8xf32>
    %54 = vector.shape_cast %53 : vector<1x4x8xf32> to vector<4x8xf32>
    %cst_18 = arith.constant dense<0.000000e+00> : vector<4x256xf32>
    %55 = tpu.matmul %54, %52, %cst_18 {dimension_numbers = #tpu.dot_dimension_numbers<[1], [0], [0], [1], [0, 0, 1, 1], [], []>} : vector<4x8xf32>, vector<8x256xf32>, vector<4x256xf32> -> vector<4x256xf32>
    %56 = arith.addf %51, %55 : vector<4x256xf32>
    %57 = vector.extract_strided_slice %37 {offsets = [0, 16], sizes = [8, 256], strides = [1, 1]} : vector<8x288xf32> to vector<8x256xf32>
    %c3 = arith.constant 3 : index
    %c0_19 = arith.constant 0 : index
    %c0_20 = arith.constant 0 : index
    %58 = vector.load %arg3[%c3, %c0_19, %c0_20] : memref<9x4x8xf32, #tpu.memory_space<vmem>>, vector<1x4x8xf32>
    %59 = vector.shape_cast %58 : vector<1x4x8xf32> to vector<4x8xf32>
    %cst_21 = arith.constant dense<0.000000e+00> : vector<4x256xf32>
    %60 = tpu.matmul %59, %57, %cst_21 {dimension_numbers = #tpu.dot_dimension_numbers<[1], [0], [0], [1], [0, 0, 1, 1], [], []>} : vector<4x8xf32>, vector<8x256xf32>, vector<4x256xf32> -> vector<4x256xf32>
    %61 = arith.addf %56, %60 : vector<4x256xf32>
    %62 = vector.extract_strided_slice %28 {offsets = [0, 16], sizes = [8, 256], strides = [1, 1]} : vector<8x288xf32> to vector<8x256xf32>
    %c4 = arith.constant 4 : index
    %c0_22 = arith.constant 0 : index
    %c0_23 = arith.constant 0 : index
    %63 = vector.load %arg3[%c4, %c0_22, %c0_23] : memref<9x4x8xf32, #tpu.memory_space<vmem>>, vector<1x4x8xf32>
    %64 = vector.shape_cast %63 : vector<1x4x8xf32> to vector<4x8xf32>
    %cst_24 = arith.constant dense<0.000000e+00> : vector<4x256xf32>
    %65 = tpu.matmul %64, %62, %cst_24 {dimension_numbers = #tpu.dot_dimension_numbers<[1], [0], [0], [1], [0, 0, 1, 1], [], []>} : vector<4x8xf32>, vector<8x256xf32>, vector<4x256xf32> -> vector<4x256xf32>
    %66 = arith.addf %61, %65 : vector<4x256xf32>
    %67 = vector.extract_strided_slice %40 {offsets = [0, 16], sizes = [8, 256], strides = [1, 1]} : vector<8x288xf32> to vector<8x256xf32>
    %c5 = arith.constant 5 : index
    %c0_25 = arith.constant 0 : index
    %c0_26 = arith.constant 0 : index
    %68 = vector.load %arg3[%c5, %c0_25, %c0_26] : memref<9x4x8xf32, #tpu.memory_space<vmem>>, vector<1x4x8xf32>
    %69 = vector.shape_cast %68 : vector<1x4x8xf32> to vector<4x8xf32>
    %cst_27 = arith.constant dense<0.000000e+00> : vector<4x256xf32>
    %70 = tpu.matmul %69, %67, %cst_27 {dimension_numbers = #tpu.dot_dimension_numbers<[1], [0], [0], [1], [0, 0, 1, 1], [], []>} : vector<4x8xf32>, vector<8x256xf32>, vector<4x256xf32> -> vector<4x256xf32>
    %71 = arith.addf %66, %70 : vector<4x256xf32>
    %72 = vector.extract_strided_slice %37 {offsets = [0, 32], sizes = [8, 256], strides = [1, 1]} : vector<8x288xf32> to vector<8x256xf32>
    %c6 = arith.constant 6 : index
    %c0_28 = arith.constant 0 : index
    %c0_29 = arith.constant 0 : index
    %73 = vector.load %arg3[%c6, %c0_28, %c0_29] : memref<9x4x8xf32, #tpu.memory_space<vmem>>, vector<1x4x8xf32>
    %74 = vector.shape_cast %73 : vector<1x4x8xf32> to vector<4x8xf32>
    %cst_30 = arith.constant dense<0.000000e+00> : vector<4x256xf32>
    %75 = tpu.matmul %74, %72, %cst_30 {dimension_numbers = #tpu.dot_dimension_numbers<[1], [0], [0], [1], [0, 0, 1, 1], [], []>} : vector<4x8xf32>, vector<8x256xf32>, vector<4x256xf32> -> vector<4x256xf32>
    %76 = arith.addf %71, %75 : vector<4x256xf32>
    %77 = vector.extract_strided_slice %28 {offsets = [0, 32], sizes = [8, 256], strides = [1, 1]} : vector<8x288xf32> to vector<8x256xf32>
    %c7 = arith.constant 7 : index
    %c0_31 = arith.constant 0 : index
    %c0_32 = arith.constant 0 : index
    %78 = vector.load %arg3[%c7, %c0_31, %c0_32] : memref<9x4x8xf32, #tpu.memory_space<vmem>>, vector<1x4x8xf32>
    %79 = vector.shape_cast %78 : vector<1x4x8xf32> to vector<4x8xf32>
    %cst_33 = arith.constant dense<0.000000e+00> : vector<4x256xf32>
    %80 = tpu.matmul %79, %77, %cst_33 {dimension_numbers = #tpu.dot_dimension_numbers<[1], [0], [0], [1], [0, 0, 1, 1], [], []>} : vector<4x8xf32>, vector<8x256xf32>, vector<4x256xf32> -> vector<4x256xf32>
    %81 = arith.addf %76, %80 : vector<4x256xf32>
    %82 = vector.extract_strided_slice %40 {offsets = [0, 32], sizes = [8, 256], strides = [1, 1]} : vector<8x288xf32> to vector<8x256xf32>
    %c8 = arith.constant 8 : index
    %c0_34 = arith.constant 0 : index
    %c0_35 = arith.constant 0 : index
    %83 = vector.load %arg3[%c8, %c0_34, %c0_35] : memref<9x4x8xf32, #tpu.memory_space<vmem>>, vector<1x4x8xf32>
    %84 = vector.shape_cast %83 : vector<1x4x8xf32> to vector<4x8xf32>
    %cst_36 = arith.constant dense<0.000000e+00> : vector<4x256xf32>
    %85 = tpu.matmul %84, %82, %cst_36 {dimension_numbers = #tpu.dot_dimension_numbers<[1], [0], [0], [1], [0, 0, 1, 1], [], []>} : vector<4x8xf32>, vector<8x256xf32>, vector<4x256xf32> -> vector<4x256xf32>
    %86 = arith.addf %81, %85 : vector<4x256xf32>
    %cst_37 = arith.constant 0.000000e+00 : f32
    %87 = vector.broadcast %cst_37 : f32 to vector<4x256xf32>
    %88 = arith.cmpf oge, %86, %87 : vector<4x256xf32>
    %cst_38 = arith.constant 1.000000e-01 : f32
    %89 = vector.broadcast %cst_38 : f32 to vector<4x256xf32>
    %90 = arith.mulf %89, %86 : vector<4x256xf32>
    %91 = arith.select %88, %86, %90 : vector<4x256xi1>, vector<4x256xf32>
    %92 = vector.extract_strided_slice %91 {offsets = [0, 16], sizes = [4, 16], strides = [1, 1]} : vector<4x256xf32> to vector<4x16xf32>
    %93 = vector.extract_strided_slice %91 {offsets = [0, 224], sizes = [4, 16], strides = [1, 1]} : vector<4x256xf32> to vector<4x16xf32>
    %94 = tpu.concatenate %92, %91, %93 in 1 : vector<4x16xf32>, vector<4x256xf32>, vector<4x16xf32> -> vector<4x288xf32>
    %95 = vector.extract_strided_slice %94 {offsets = [0, 287], sizes = [4, 1], strides = [1, 1]} : vector<4x288xf32> to vector<4x1xf32>
    %96 = vector.extract_strided_slice %94 {offsets = [0, 0], sizes = [4, 287], strides = [1, 1]} : vector<4x288xf32> to vector<4x287xf32>
    %97 = tpu.concatenate %95, %96 in 1 : vector<4x1xf32>, vector<4x287xf32> -> vector<4x288xf32>
    %98 = vector.extract_strided_slice %94 {offsets = [0, 1], sizes = [4, 287], strides = [1, 1]} : vector<4x288xf32> to vector<4x287xf32>
    %99 = vector.extract_strided_slice %94 {offsets = [0, 0], sizes = [4, 1], strides = [1, 1]} : vector<4x288xf32> to vector<4x1xf32>
    %100 = tpu.concatenate %98, %99 in 1 : vector<4x287xf32>, vector<4x1xf32> -> vector<4x288xf32>
    %101 = vector.shape_cast %18 : vector<1x288xi1> to vector<1x288xi1>
    %102 = vector.broadcast %101 : vector<1x288xi1> to vector<4x288xi1>
    %103 = arith.select %102, %100, %97 : vector<4x288xi1>, vector<4x288xf32>
    %104 = vector.shape_cast %20 : vector<1x288xi1> to vector<1x288xi1>
    %105 = vector.broadcast %104 : vector<1x288xi1> to vector<4x288xi1>
    %106 = arith.select %105, %97, %100 : vector<4x288xi1>, vector<4x288xf32>
    %cst_39 = arith.constant 0.000000e+00 : f32
    %107 = vector.broadcast %cst_39 : f32 to vector<4x256xf32>
    %108 = vector.extract_strided_slice %103 {offsets = [0, 0], sizes = [4, 256], strides = [1, 1]} : vector<4x288xf32> to vector<4x256xf32>
    %c0_40 = arith.constant 0 : index
    %c0_41 = arith.constant 0 : index
    %c0_42 = arith.constant 0 : index
    %109 = vector.load %arg4[%c0_40, %c0_41, %c0_42] : memref<9x4x4xf32, #tpu.memory_space<vmem>>, vector<1x4x4xf32>
    %110 = vector.shape_cast %109 : vector<1x4x4xf32> to vector<4x4xf32>
    %cst_43 = arith.constant dense<0.000000e+00> : vector<4x256xf32>
    %111 = tpu.matmul %110, %108, %cst_43 {dimension_numbers = #tpu.dot_dimension_numbers<[1], [0], [0], [1], [0, 0, 1, 1], [], []>} : vector<4x4xf32>, vector<4x256xf32>, vector<4x256xf32> -> vector<4x256xf32>
    %112 = arith.addf %107, %111 : vector<4x256xf32>
    %113 = vector.extract_strided_slice %94 {offsets = [0, 0], sizes = [4, 256], strides = [1, 1]} : vector<4x288xf32> to vector<4x256xf32>
    %c1_44 = arith.constant 1 : index
    %c0_45 = arith.constant 0 : index
    %c0_46 = arith.constant 0 : index
    %114 = vector.load %arg4[%c1_44, %c0_45, %c0_46] : memref<9x4x4xf32, #tpu.memory_space<vmem>>, vector<1x4x4xf32>
    %115 = vector.shape_cast %114 : vector<1x4x4xf32> to vector<4x4xf32>
    %cst_47 = arith.constant dense<0.000000e+00> : vector<4x256xf32>
    %116 = tpu.matmul %115, %113, %cst_47 {dimension_numbers = #tpu.dot_dimension_numbers<[1], [0], [0], [1], [0, 0, 1, 1], [], []>} : vector<4x4xf32>, vector<4x256xf32>, vector<4x256xf32> -> vector<4x256xf32>
    %117 = arith.addf %112, %116 : vector<4x256xf32>
    %118 = vector.extract_strided_slice %106 {offsets = [0, 0], sizes = [4, 256], strides = [1, 1]} : vector<4x288xf32> to vector<4x256xf32>
    %c2_48 = arith.constant 2 : index
    %c0_49 = arith.constant 0 : index
    %c0_50 = arith.constant 0 : index
    %119 = vector.load %arg4[%c2_48, %c0_49, %c0_50] : memref<9x4x4xf32, #tpu.memory_space<vmem>>, vector<1x4x4xf32>
    %120 = vector.shape_cast %119 : vector<1x4x4xf32> to vector<4x4xf32>
    %cst_51 = arith.constant dense<0.000000e+00> : vector<4x256xf32>
    %121 = tpu.matmul %120, %118, %cst_51 {dimension_numbers = #tpu.dot_dimension_numbers<[1], [0], [0], [1], [0, 0, 1, 1], [], []>} : vector<4x4xf32>, vector<4x256xf32>, vector<4x256xf32> -> vector<4x256xf32>
    %122 = arith.addf %117, %121 : vector<4x256xf32>
    %123 = vector.extract_strided_slice %103 {offsets = [0, 16], sizes = [4, 256], strides = [1, 1]} : vector<4x288xf32> to vector<4x256xf32>
    %c3_52 = arith.constant 3 : index
    %c0_53 = arith.constant 0 : index
    %c0_54 = arith.constant 0 : index
    %124 = vector.load %arg4[%c3_52, %c0_53, %c0_54] : memref<9x4x4xf32, #tpu.memory_space<vmem>>, vector<1x4x4xf32>
    %125 = vector.shape_cast %124 : vector<1x4x4xf32> to vector<4x4xf32>
    %cst_55 = arith.constant dense<0.000000e+00> : vector<4x256xf32>
    %126 = tpu.matmul %125, %123, %cst_55 {dimension_numbers = #tpu.dot_dimension_numbers<[1], [0], [0], [1], [0, 0, 1, 1], [], []>} : vector<4x4xf32>, vector<4x256xf32>, vector<4x256xf32> -> vector<4x256xf32>
    %127 = arith.addf %122, %126 : vector<4x256xf32>
    %128 = vector.extract_strided_slice %94 {offsets = [0, 16], sizes = [4, 256], strides = [1, 1]} : vector<4x288xf32> to vector<4x256xf32>
    %c4_56 = arith.constant 4 : index
    %c0_57 = arith.constant 0 : index
    %c0_58 = arith.constant 0 : index
    %129 = vector.load %arg4[%c4_56, %c0_57, %c0_58] : memref<9x4x4xf32, #tpu.memory_space<vmem>>, vector<1x4x4xf32>
    %130 = vector.shape_cast %129 : vector<1x4x4xf32> to vector<4x4xf32>
    %cst_59 = arith.constant dense<0.000000e+00> : vector<4x256xf32>
    %131 = tpu.matmul %130, %128, %cst_59 {dimension_numbers = #tpu.dot_dimension_numbers<[1], [0], [0], [1], [0, 0, 1, 1], [], []>} : vector<4x4xf32>, vector<4x256xf32>, vector<4x256xf32> -> vector<4x256xf32>
    %132 = arith.addf %127, %131 : vector<4x256xf32>
    %133 = vector.extract_strided_slice %106 {offsets = [0, 16], sizes = [4, 256], strides = [1, 1]} : vector<4x288xf32> to vector<4x256xf32>
    %c5_60 = arith.constant 5 : index
    %c0_61 = arith.constant 0 : index
    %c0_62 = arith.constant 0 : index
    %134 = vector.load %arg4[%c5_60, %c0_61, %c0_62] : memref<9x4x4xf32, #tpu.memory_space<vmem>>, vector<1x4x4xf32>
    %135 = vector.shape_cast %134 : vector<1x4x4xf32> to vector<4x4xf32>
    %cst_63 = arith.constant dense<0.000000e+00> : vector<4x256xf32>
    %136 = tpu.matmul %135, %133, %cst_63 {dimension_numbers = #tpu.dot_dimension_numbers<[1], [0], [0], [1], [0, 0, 1, 1], [], []>} : vector<4x4xf32>, vector<4x256xf32>, vector<4x256xf32> -> vector<4x256xf32>
    %137 = arith.addf %132, %136 : vector<4x256xf32>
    %138 = vector.extract_strided_slice %103 {offsets = [0, 32], sizes = [4, 256], strides = [1, 1]} : vector<4x288xf32> to vector<4x256xf32>
    %c6_64 = arith.constant 6 : index
    %c0_65 = arith.constant 0 : index
    %c0_66 = arith.constant 0 : index
    %139 = vector.load %arg4[%c6_64, %c0_65, %c0_66] : memref<9x4x4xf32, #tpu.memory_space<vmem>>, vector<1x4x4xf32>
    %140 = vector.shape_cast %139 : vector<1x4x4xf32> to vector<4x4xf32>
    %cst_67 = arith.constant dense<0.000000e+00> : vector<4x256xf32>
    %141 = tpu.matmul %140, %138, %cst_67 {dimension_numbers = #tpu.dot_dimension_numbers<[1], [0], [0], [1], [0, 0, 1, 1], [], []>} : vector<4x4xf32>, vector<4x256xf32>, vector<4x256xf32> -> vector<4x256xf32>
    %142 = arith.addf %137, %141 : vector<4x256xf32>
    %143 = vector.extract_strided_slice %94 {offsets = [0, 32], sizes = [4, 256], strides = [1, 1]} : vector<4x288xf32> to vector<4x256xf32>
    %c7_68 = arith.constant 7 : index
    %c0_69 = arith.constant 0 : index
    %c0_70 = arith.constant 0 : index
    %144 = vector.load %arg4[%c7_68, %c0_69, %c0_70] : memref<9x4x4xf32, #tpu.memory_space<vmem>>, vector<1x4x4xf32>
    %145 = vector.shape_cast %144 : vector<1x4x4xf32> to vector<4x4xf32>
    %cst_71 = arith.constant dense<0.000000e+00> : vector<4x256xf32>
    %146 = tpu.matmul %145, %143, %cst_71 {dimension_numbers = #tpu.dot_dimension_numbers<[1], [0], [0], [1], [0, 0, 1, 1], [], []>} : vector<4x4xf32>, vector<4x256xf32>, vector<4x256xf32> -> vector<4x256xf32>
    %147 = arith.addf %142, %146 : vector<4x256xf32>
    %148 = vector.extract_strided_slice %106 {offsets = [0, 32], sizes = [4, 256], strides = [1, 1]} : vector<4x288xf32> to vector<4x256xf32>
    %c8_72 = arith.constant 8 : index
    %c0_73 = arith.constant 0 : index
    %c0_74 = arith.constant 0 : index
    %149 = vector.load %arg4[%c8_72, %c0_73, %c0_74] : memref<9x4x4xf32, #tpu.memory_space<vmem>>, vector<1x4x4xf32>
    %150 = vector.shape_cast %149 : vector<1x4x4xf32> to vector<4x4xf32>
    %cst_75 = arith.constant dense<0.000000e+00> : vector<4x256xf32>
    %151 = tpu.matmul %150, %148, %cst_75 {dimension_numbers = #tpu.dot_dimension_numbers<[1], [0], [0], [1], [0, 0, 1, 1], [], []>} : vector<4x4xf32>, vector<4x256xf32>, vector<4x256xf32> -> vector<4x256xf32>
    %152 = arith.addf %147, %151 : vector<4x256xf32>
    %cst_76 = arith.constant 0.000000e+00 : f32
    %153 = vector.broadcast %cst_76 : f32 to vector<4x256xf32>
    %154 = arith.cmpf oge, %152, %153 : vector<4x256xf32>
    %cst_77 = arith.constant 1.000000e-01 : f32
    %155 = vector.broadcast %cst_77 : f32 to vector<4x256xf32>
    %156 = arith.mulf %155, %152 : vector<4x256xf32>
    %157 = arith.select %154, %152, %156 : vector<4x256xi1>, vector<4x256xf32>
    %c0_78 = arith.constant 0 : index
    %c0_79 = arith.constant 0 : index
    %c0_80 = arith.constant 0 : index
    %158 = vector.load %arg5[%c0_78, %c0_79, %c0_80] : memref<2x4x256xf32, #tpu.memory_space<vmem>>, vector<1x4x256xf32>
    %159 = vector.shape_cast %158 : vector<1x4x256xf32> to vector<4x256xf32>
    %160 = vector.shape_cast %157 : vector<4x256xf32> to vector<1x4x256xf32>
    tpu.vector_store %arg5[%c0_78, %c0_79, %c0_80], %160 {strides = array<i32>} : memref<2x4x256xf32, #tpu.memory_space<vmem>>, vector<1x4x256xf32>,
    %c1_81 = arith.constant 1 : index
    %c0_82 = arith.constant 0 : index
    %c0_83 = arith.constant 0 : index
    %161 = vector.load %arg1[%c1_81, %c0_82, %c0_83] : memref<2x4x256xf32, #tpu.memory_space<vmem>>, vector<1x4x256xf32>
    %162 = vector.shape_cast %161 : vector<1x4x256xf32> to vector<4x256xf32>
    %c1_84 = arith.constant 1 : index
    %c0_85 = arith.constant 0 : index
    %c0_86 = arith.constant 0 : index
    %163 = vector.load %arg2[%c1_84, %c0_85, %c0_86] : memref<2x4x256xf32, #tpu.memory_space<vmem>>, vector<1x4x256xf32>
    %164 = vector.shape_cast %163 : vector<1x4x256xf32> to vector<4x256xf32>
    %165 = tpu.concatenate %162, %164 in 0 : vector<4x256xf32>, vector<4x256xf32> -> vector<8x256xf32>
    %166 = vector.extract_strided_slice %165 {offsets = [0, 16], sizes = [8, 16], strides = [1, 1]} : vector<8x256xf32> to vector<8x16xf32>
    %167 = vector.extract_strided_slice %165 {offsets = [0, 224], sizes = [8, 16], strides = [1, 1]} : vector<8x256xf32> to vector<8x16xf32>
    %168 = tpu.concatenate %166, %165, %167 in 1 : vector<8x16xf32>, vector<8x256xf32>, vector<8x16xf32> -> vector<8x288xf32>
    %169 = vector.extract_strided_slice %168 {offsets = [0, 287], sizes = [8, 1], strides = [1, 1]} : vector<8x288xf32> to vector<8x1xf32>
    %170 = vector.extract_strided_slice %168 {offsets = [0, 0], sizes = [8, 287], strides = [1, 1]} : vector<8x288xf32> to vector<8x287xf32>
    %171 = tpu.concatenate %169, %170 in 1 : vector<8x1xf32>, vector<8x287xf32> -> vector<8x288xf32>
    %172 = vector.extract_strided_slice %168 {offsets = [0, 1], sizes = [8, 287], strides = [1, 1]} : vector<8x288xf32> to vector<8x287xf32>
    %173 = vector.extract_strided_slice %168 {offsets = [0, 0], sizes = [8, 1], strides = [1, 1]} : vector<8x288xf32> to vector<8x1xf32>
    %174 = tpu.concatenate %172, %173 in 1 : vector<8x287xf32>, vector<8x1xf32> -> vector<8x288xf32>
    %175 = vector.shape_cast %18 : vector<1x288xi1> to vector<1x288xi1>
    %176 = vector.broadcast %175 : vector<1x288xi1> to vector<8x288xi1>
    %177 = arith.select %176, %174, %171 : vector<8x288xi1>, vector<8x288xf32>
    %178 = vector.shape_cast %20 : vector<1x288xi1> to vector<1x288xi1>
    %179 = vector.broadcast %178 : vector<1x288xi1> to vector<8x288xi1>
    %180 = arith.select %179, %171, %174 : vector<8x288xi1>, vector<8x288xf32>
    %cst_87 = arith.constant 0.000000e+00 : f32
    %181 = vector.broadcast %cst_87 : f32 to vector<4x256xf32>
    %182 = vector.extract_strided_slice %177 {offsets = [0, 0], sizes = [8, 256], strides = [1, 1]} : vector<8x288xf32> to vector<8x256xf32>
    %c0_88 = arith.constant 0 : index
    %c0_89 = arith.constant 0 : index
    %c0_90 = arith.constant 0 : index
    %183 = vector.load %arg3[%c0_88, %c0_89, %c0_90] : memref<9x4x8xf32, #tpu.memory_space<vmem>>, vector<1x4x8xf32>
    %184 = vector.shape_cast %183 : vector<1x4x8xf32> to vector<4x8xf32>
    %cst_91 = arith.constant dense<0.000000e+00> : vector<4x256xf32>
    %185 = tpu.matmul %184, %182, %cst_91 {dimension_numbers = #tpu.dot_dimension_numbers<[1], [0], [0], [1], [0, 0, 1, 1], [], []>} : vector<4x8xf32>, vector<8x256xf32>, vector<4x256xf32> -> vector<4x256xf32>
    %186 = arith.addf %181, %185 : vector<4x256xf32>
    %187 = vector.extract_strided_slice %168 {offsets = [0, 0], sizes = [8, 256], strides = [1, 1]} : vector<8x288xf32> to vector<8x256xf32>
    %c1_92 = arith.constant 1 : index
    %c0_93 = arith.constant 0 : index
    %c0_94 = arith.constant 0 : index
    %188 = vector.load %arg3[%c1_92, %c0_93, %c0_94] : memref<9x4x8xf32, #tpu.memory_space<vmem>>, vector<1x4x8xf32>
    %189 = vector.shape_cast %188 : vector<1x4x8xf32> to vector<4x8xf32>
    %cst_95 = arith.constant dense<0.000000e+00> : vector<4x256xf32>
    %190 = tpu.matmul %189, %187, %cst_95 {dimension_numbers = #tpu.dot_dimension_numbers<[1], [0], [0], [1], [0, 0, 1, 1], [], []>} : vector<4x8xf32>, vector<8x256xf32>, vector<4x256xf32> -> vector<4x256xf32>
    %191 = arith.addf %186, %190 : vector<4x256xf32>
    %192 = vector.extract_strided_slice %180 {offsets = [0, 0], sizes = [8, 256], strides = [1, 1]} : vector<8x288xf32> to vector<8x256xf32>
    %c2_96 = arith.constant 2 : index
    %c0_97 = arith.constant 0 : index
    %c0_98 = arith.constant 0 : index
    %193 = vector.load %arg3[%c2_96, %c0_97, %c0_98] : memref<9x4x8xf32, #tpu.memory_space<vmem>>, vector<1x4x8xf32>
    %194 = vector.shape_cast %193 : vector<1x4x8xf32> to vector<4x8xf32>
    %cst_99 = arith.constant dense<0.000000e+00> : vector<4x256xf32>
    %195 = tpu.matmul %194, %192, %cst_99 {dimension_numbers = #tpu.dot_dimension_numbers<[1], [0], [0], [1], [0, 0, 1, 1], [], []>} : vector<4x8xf32>, vector<8x256xf32>, vector<4x256xf32> -> vector<4x256xf32>
    %196 = arith.addf %191, %195 : vector<4x256xf32>
    %197 = vector.extract_strided_slice %177 {offsets = [0, 16], sizes = [8, 256], strides = [1, 1]} : vector<8x288xf32> to vector<8x256xf32>
    %c3_100 = arith.constant 3 : index
    %c0_101 = arith.constant 0 : index
    %c0_102 = arith.constant 0 : index
    %198 = vector.load %arg3[%c3_100, %c0_101, %c0_102] : memref<9x4x8xf32, #tpu.memory_space<vmem>>, vector<1x4x8xf32>
    %199 = vector.shape_cast %198 : vector<1x4x8xf32> to vector<4x8xf32>
    %cst_103 = arith.constant dense<0.000000e+00> : vector<4x256xf32>
    %200 = tpu.matmul %199, %197, %cst_103 {dimension_numbers = #tpu.dot_dimension_numbers<[1], [0], [0], [1], [0, 0, 1, 1], [], []>} : vector<4x8xf32>, vector<8x256xf32>, vector<4x256xf32> -> vector<4x256xf32>
    %201 = arith.addf %196, %200 : vector<4x256xf32>
    %202 = vector.extract_strided_slice %168 {offsets = [0, 16], sizes = [8, 256], strides = [1, 1]} : vector<8x288xf32> to vector<8x256xf32>
    %c4_104 = arith.constant 4 : index
    %c0_105 = arith.constant 0 : index
    %c0_106 = arith.constant 0 : index
    %203 = vector.load %arg3[%c4_104, %c0_105, %c0_106] : memref<9x4x8xf32, #tpu.memory_space<vmem>>, vector<1x4x8xf32>
    %204 = vector.shape_cast %203 : vector<1x4x8xf32> to vector<4x8xf32>
    %cst_107 = arith.constant dense<0.000000e+00> : vector<4x256xf32>
    %205 = tpu.matmul %204, %202, %cst_107 {dimension_numbers = #tpu.dot_dimension_numbers<[1], [0], [0], [1], [0, 0, 1, 1], [], []>} : vector<4x8xf32>, vector<8x256xf32>, vector<4x256xf32> -> vector<4x256xf32>
    %206 = arith.addf %201, %205 : vector<4x256xf32>
    %207 = vector.extract_strided_slice %180 {offsets = [0, 16], sizes = [8, 256], strides = [1, 1]} : vector<8x288xf32> to vector<8x256xf32>
    %c5_108 = arith.constant 5 : index
    %c0_109 = arith.constant 0 : index
    %c0_110 = arith.constant 0 : index
    %208 = vector.load %arg3[%c5_108, %c0_109, %c0_110] : memref<9x4x8xf32, #tpu.memory_space<vmem>>, vector<1x4x8xf32>
    %209 = vector.shape_cast %208 : vector<1x4x8xf32> to vector<4x8xf32>
    %cst_111 = arith.constant dense<0.000000e+00> : vector<4x256xf32>
    %210 = tpu.matmul %209, %207, %cst_111 {dimension_numbers = #tpu.dot_dimension_numbers<[1], [0], [0], [1], [0, 0, 1, 1], [], []>} : vector<4x8xf32>, vector<8x256xf32>, vector<4x256xf32> -> vector<4x256xf32>
    %211 = arith.addf %206, %210 : vector<4x256xf32>
    %212 = vector.extract_strided_slice %177 {offsets = [0, 32], sizes = [8, 256], strides = [1, 1]} : vector<8x288xf32> to vector<8x256xf32>
    %c6_112 = arith.constant 6 : index
    %c0_113 = arith.constant 0 : index
    %c0_114 = arith.constant 0 : index
    %213 = vector.load %arg3[%c6_112, %c0_113, %c0_114] : memref<9x4x8xf32, #tpu.memory_space<vmem>>, vector<1x4x8xf32>
    %214 = vector.shape_cast %213 : vector<1x4x8xf32> to vector<4x8xf32>
    %cst_115 = arith.constant dense<0.000000e+00> : vector<4x256xf32>
    %215 = tpu.matmul %214, %212, %cst_115 {dimension_numbers = #tpu.dot_dimension_numbers<[1], [0], [0], [1], [0, 0, 1, 1], [], []>} : vector<4x8xf32>, vector<8x256xf32>, vector<4x256xf32> -> vector<4x256xf32>
    %216 = arith.addf %211, %215 : vector<4x256xf32>
    %217 = vector.extract_strided_slice %168 {offsets = [0, 32], sizes = [8, 256], strides = [1, 1]} : vector<8x288xf32> to vector<8x256xf32>
    %c7_116 = arith.constant 7 : index
    %c0_117 = arith.constant 0 : index
    %c0_118 = arith.constant 0 : index
    %218 = vector.load %arg3[%c7_116, %c0_117, %c0_118] : memref<9x4x8xf32, #tpu.memory_space<vmem>>, vector<1x4x8xf32>
    %219 = vector.shape_cast %218 : vector<1x4x8xf32> to vector<4x8xf32>
    %cst_119 = arith.constant dense<0.000000e+00> : vector<4x256xf32>
    %220 = tpu.matmul %219, %217, %cst_119 {dimension_numbers = #tpu.dot_dimension_numbers<[1], [0], [0], [1], [0, 0, 1, 1], [], []>} : vector<4x8xf32>, vector<8x256xf32>, vector<4x256xf32> -> vector<4x256xf32>
    %221 = arith.addf %216, %220 : vector<4x256xf32>
    %222 = vector.extract_strided_slice %180 {offsets = [0, 32], sizes = [8, 256], strides = [1, 1]} : vector<8x288xf32> to vector<8x256xf32>
    %c8_120 = arith.constant 8 : index
    %c0_121 = arith.constant 0 : index
    %c0_122 = arith.constant 0 : index
    %223 = vector.load %arg3[%c8_120, %c0_121, %c0_122] : memref<9x4x8xf32, #tpu.memory_space<vmem>>, vector<1x4x8xf32>
    %224 = vector.shape_cast %223 : vector<1x4x8xf32> to vector<4x8xf32>
    %cst_123 = arith.constant dense<0.000000e+00> : vector<4x256xf32>
    %225 = tpu.matmul %224, %222, %cst_123 {dimension_numbers = #tpu.dot_dimension_numbers<[1], [0], [0], [1], [0, 0, 1, 1], [], []>} : vector<4x8xf32>, vector<8x256xf32>, vector<4x256xf32> -> vector<4x256xf32>
    %226 = arith.addf %221, %225 : vector<4x256xf32>
    %cst_124 = arith.constant 0.000000e+00 : f32
    %227 = vector.broadcast %cst_124 : f32 to vector<4x256xf32>
    %228 = arith.cmpf oge, %226, %227 : vector<4x256xf32>
    %cst_125 = arith.constant 1.000000e-01 : f32
    %229 = vector.broadcast %cst_125 : f32 to vector<4x256xf32>
    %230 = arith.mulf %229, %226 : vector<4x256xf32>
    %231 = arith.select %228, %226, %230 : vector<4x256xi1>, vector<4x256xf32>
    %232 = vector.extract_strided_slice %231 {offsets = [0, 16], sizes = [4, 16], strides = [1, 1]} : vector<4x256xf32> to vector<4x16xf32>
    %233 = vector.extract_strided_slice %231 {offsets = [0, 224], sizes = [4, 16], strides = [1, 1]} : vector<4x256xf32> to vector<4x16xf32>
    %234 = tpu.concatenate %232, %231, %233 in 1 : vector<4x16xf32>, vector<4x256xf32>, vector<4x16xf32> -> vector<4x288xf32>
    %235 = vector.extract_strided_slice %234 {offsets = [0, 287], sizes = [4, 1], strides = [1, 1]} : vector<4x288xf32> to vector<4x1xf32>
    %236 = vector.extract_strided_slice %234 {offsets = [0, 0], sizes = [4, 287], strides = [1, 1]} : vector<4x288xf32> to vector<4x287xf32>
    %237 = tpu.concatenate %235, %236 in 1 : vector<4x1xf32>, vector<4x287xf32> -> vector<4x288xf32>
    %238 = vector.extract_strided_slice %234 {offsets = [0, 1], sizes = [4, 287], strides = [1, 1]} : vector<4x288xf32> to vector<4x287xf32>
    %239 = vector.extract_strided_slice %234 {offsets = [0, 0], sizes = [4, 1], strides = [1, 1]} : vector<4x288xf32> to vector<4x1xf32>
    %240 = tpu.concatenate %238, %239 in 1 : vector<4x287xf32>, vector<4x1xf32> -> vector<4x288xf32>
    %241 = vector.shape_cast %18 : vector<1x288xi1> to vector<1x288xi1>
    %242 = vector.broadcast %241 : vector<1x288xi1> to vector<4x288xi1>
    %243 = arith.select %242, %240, %237 : vector<4x288xi1>, vector<4x288xf32>
    %244 = vector.shape_cast %20 : vector<1x288xi1> to vector<1x288xi1>
    %245 = vector.broadcast %244 : vector<1x288xi1> to vector<4x288xi1>
    %246 = arith.select %245, %237, %240 : vector<4x288xi1>, vector<4x288xf32>
    %cst_126 = arith.constant 0.000000e+00 : f32
    %247 = vector.broadcast %cst_126 : f32 to vector<4x256xf32>
    %248 = vector.extract_strided_slice %243 {offsets = [0, 0], sizes = [4, 256], strides = [1, 1]} : vector<4x288xf32> to vector<4x256xf32>
    %c0_127 = arith.constant 0 : index
    %c0_128 = arith.constant 0 : index
    %c0_129 = arith.constant 0 : index
    %249 = vector.load %arg4[%c0_127, %c0_128, %c0_129] : memref<9x4x4xf32, #tpu.memory_space<vmem>>, vector<1x4x4xf32>
    %250 = vector.shape_cast %249 : vector<1x4x4xf32> to vector<4x4xf32>
    %cst_130 = arith.constant dense<0.000000e+00> : vector<4x256xf32>
    %251 = tpu.matmul %250, %248, %cst_130 {dimension_numbers = #tpu.dot_dimension_numbers<[1], [0], [0], [1], [0, 0, 1, 1], [], []>} : vector<4x4xf32>, vector<4x256xf32>, vector<4x256xf32> -> vector<4x256xf32>
    %252 = arith.addf %247, %251 : vector<4x256xf32>
    %253 = vector.extract_strided_slice %234 {offsets = [0, 0], sizes = [4, 256], strides = [1, 1]} : vector<4x288xf32> to vector<4x256xf32>
    %c1_131 = arith.constant 1 : index
    %c0_132 = arith.constant 0 : index
    %c0_133 = arith.constant 0 : index
    %254 = vector.load %arg4[%c1_131, %c0_132, %c0_133] : memref<9x4x4xf32, #tpu.memory_space<vmem>>, vector<1x4x4xf32>
    %255 = vector.shape_cast %254 : vector<1x4x4xf32> to vector<4x4xf32>
    %cst_134 = arith.constant dense<0.000000e+00> : vector<4x256xf32>
    %256 = tpu.matmul %255, %253, %cst_134 {dimension_numbers = #tpu.dot_dimension_numbers<[1], [0], [0], [1], [0, 0, 1, 1], [], []>} : vector<4x4xf32>, vector<4x256xf32>, vector<4x256xf32> -> vector<4x256xf32>
    %257 = arith.addf %252, %256 : vector<4x256xf32>
    %258 = vector.extract_strided_slice %246 {offsets = [0, 0], sizes = [4, 256], strides = [1, 1]} : vector<4x288xf32> to vector<4x256xf32>
    %c2_135 = arith.constant 2 : index
    %c0_136 = arith.constant 0 : index
    %c0_137 = arith.constant 0 : index
    %259 = vector.load %arg4[%c2_135, %c0_136, %c0_137] : memref<9x4x4xf32, #tpu.memory_space<vmem>>, vector<1x4x4xf32>
    %260 = vector.shape_cast %259 : vector<1x4x4xf32> to vector<4x4xf32>
    %cst_138 = arith.constant dense<0.000000e+00> : vector<4x256xf32>
    %261 = tpu.matmul %260, %258, %cst_138 {dimension_numbers = #tpu.dot_dimension_numbers<[1], [0], [0], [1], [0, 0, 1, 1], [], []>} : vector<4x4xf32>, vector<4x256xf32>, vector<4x256xf32> -> vector<4x256xf32>
    %262 = arith.addf %257, %261 : vector<4x256xf32>
    %263 = vector.extract_strided_slice %243 {offsets = [0, 16], sizes = [4, 256], strides = [1, 1]} : vector<4x288xf32> to vector<4x256xf32>
    %c3_139 = arith.constant 3 : index
    %c0_140 = arith.constant 0 : index
    %c0_141 = arith.constant 0 : index
    %264 = vector.load %arg4[%c3_139, %c0_140, %c0_141] : memref<9x4x4xf32, #tpu.memory_space<vmem>>, vector<1x4x4xf32>
    %265 = vector.shape_cast %264 : vector<1x4x4xf32> to vector<4x4xf32>
    %cst_142 = arith.constant dense<0.000000e+00> : vector<4x256xf32>
    %266 = tpu.matmul %265, %263, %cst_142 {dimension_numbers = #tpu.dot_dimension_numbers<[1], [0], [0], [1], [0, 0, 1, 1], [], []>} : vector<4x4xf32>, vector<4x256xf32>, vector<4x256xf32> -> vector<4x256xf32>
    %267 = arith.addf %262, %266 : vector<4x256xf32>
    %268 = vector.extract_strided_slice %234 {offsets = [0, 16], sizes = [4, 256], strides = [1, 1]} : vector<4x288xf32> to vector<4x256xf32>
    %c4_143 = arith.constant 4 : index
    %c0_144 = arith.constant 0 : index
    %c0_145 = arith.constant 0 : index
    %269 = vector.load %arg4[%c4_143, %c0_144, %c0_145] : memref<9x4x4xf32, #tpu.memory_space<vmem>>, vector<1x4x4xf32>
    %270 = vector.shape_cast %269 : vector<1x4x4xf32> to vector<4x4xf32>
    %cst_146 = arith.constant dense<0.000000e+00> : vector<4x256xf32>
    %271 = tpu.matmul %270, %268, %cst_146 {dimension_numbers = #tpu.dot_dimension_numbers<[1], [0], [0], [1], [0, 0, 1, 1], [], []>} : vector<4x4xf32>, vector<4x256xf32>, vector<4x256xf32> -> vector<4x256xf32>
    %272 = arith.addf %267, %271 : vector<4x256xf32>
    %273 = vector.extract_strided_slice %246 {offsets = [0, 16], sizes = [4, 256], strides = [1, 1]} : vector<4x288xf32> to vector<4x256xf32>
    %c5_147 = arith.constant 5 : index
    %c0_148 = arith.constant 0 : index
    %c0_149 = arith.constant 0 : index
    %274 = vector.load %arg4[%c5_147, %c0_148, %c0_149] : memref<9x4x4xf32, #tpu.memory_space<vmem>>, vector<1x4x4xf32>
    %275 = vector.shape_cast %274 : vector<1x4x4xf32> to vector<4x4xf32>
    %cst_150 = arith.constant dense<0.000000e+00> : vector<4x256xf32>
    %276 = tpu.matmul %275, %273, %cst_150 {dimension_numbers = #tpu.dot_dimension_numbers<[1], [0], [0], [1], [0, 0, 1, 1], [], []>} : vector<4x4xf32>, vector<4x256xf32>, vector<4x256xf32> -> vector<4x256xf32>
    %277 = arith.addf %272, %276 : vector<4x256xf32>
    %278 = vector.extract_strided_slice %243 {offsets = [0, 32], sizes = [4, 256], strides = [1, 1]} : vector<4x288xf32> to vector<4x256xf32>
    %c6_151 = arith.constant 6 : index
    %c0_152 = arith.constant 0 : index
    %c0_153 = arith.constant 0 : index
    %279 = vector.load %arg4[%c6_151, %c0_152, %c0_153] : memref<9x4x4xf32, #tpu.memory_space<vmem>>, vector<1x4x4xf32>
    %280 = vector.shape_cast %279 : vector<1x4x4xf32> to vector<4x4xf32>
    %cst_154 = arith.constant dense<0.000000e+00> : vector<4x256xf32>
    %281 = tpu.matmul %280, %278, %cst_154 {dimension_numbers = #tpu.dot_dimension_numbers<[1], [0], [0], [1], [0, 0, 1, 1], [], []>} : vector<4x4xf32>, vector<4x256xf32>, vector<4x256xf32> -> vector<4x256xf32>
    %282 = arith.addf %277, %281 : vector<4x256xf32>
    %283 = vector.extract_strided_slice %234 {offsets = [0, 32], sizes = [4, 256], strides = [1, 1]} : vector<4x288xf32> to vector<4x256xf32>
    %c7_155 = arith.constant 7 : index
    %c0_156 = arith.constant 0 : index
    %c0_157 = arith.constant 0 : index
    %284 = vector.load %arg4[%c7_155, %c0_156, %c0_157] : memref<9x4x4xf32, #tpu.memory_space<vmem>>, vector<1x4x4xf32>
    %285 = vector.shape_cast %284 : vector<1x4x4xf32> to vector<4x4xf32>
    %cst_158 = arith.constant dense<0.000000e+00> : vector<4x256xf32>
    %286 = tpu.matmul %285, %283, %cst_158 {dimension_numbers = #tpu.dot_dimension_numbers<[1], [0], [0], [1], [0, 0, 1, 1], [], []>} : vector<4x4xf32>, vector<4x256xf32>, vector<4x256xf32> -> vector<4x256xf32>
    %287 = arith.addf %282, %286 : vector<4x256xf32>
    %288 = vector.extract_strided_slice %246 {offsets = [0, 32], sizes = [4, 256], strides = [1, 1]} : vector<4x288xf32> to vector<4x256xf32>
    %c8_159 = arith.constant 8 : index
    %c0_160 = arith.constant 0 : index
    %c0_161 = arith.constant 0 : index
    %289 = vector.load %arg4[%c8_159, %c0_160, %c0_161] : memref<9x4x4xf32, #tpu.memory_space<vmem>>, vector<1x4x4xf32>
    %290 = vector.shape_cast %289 : vector<1x4x4xf32> to vector<4x4xf32>
    %cst_162 = arith.constant dense<0.000000e+00> : vector<4x256xf32>
    %291 = tpu.matmul %290, %288, %cst_162 {dimension_numbers = #tpu.dot_dimension_numbers<[1], [0], [0], [1], [0, 0, 1, 1], [], []>} : vector<4x4xf32>, vector<4x256xf32>, vector<4x256xf32> -> vector<4x256xf32>
    %292 = arith.addf %287, %291 : vector<4x256xf32>
    %cst_163 = arith.constant 0.000000e+00 : f32
    %293 = vector.broadcast %cst_163 : f32 to vector<4x256xf32>
    %294 = arith.cmpf oge, %292, %293 : vector<4x256xf32>
    %cst_164 = arith.constant 1.000000e-01 : f32
    %295 = vector.broadcast %cst_164 : f32 to vector<4x256xf32>
    %296 = arith.mulf %295, %292 : vector<4x256xf32>
    %297 = arith.select %294, %292, %296 : vector<4x256xi1>, vector<4x256xf32>
    %c1_165 = arith.constant 1 : index
    %c0_166 = arith.constant 0 : index
    %c0_167 = arith.constant 0 : index
    %298 = vector.load %arg5[%c1_165, %c0_166, %c0_167] : memref<2x4x256xf32, #tpu.memory_space<vmem>>, vector<1x4x256xf32>
    %299 = vector.shape_cast %298 : vector<1x4x256xf32> to vector<4x256xf32>
    %300 = vector.shape_cast %297 : vector<4x256xf32> to vector<1x4x256xf32>
    tpu.vector_store %arg5[%c1_165, %c0_166, %c0_167], %300 {strides = array<i32>} : memref<2x4x256xf32, #tpu.memory_space<vmem>>, vector<1x4x256xf32>,
    return
  }
  func.func @transform_0(%arg0: i32) -> (i32, i32, i32) {
    %c0_i32 = arith.constant 0 : i32
    %c0_i32_0 = arith.constant 0 : i32
    %c0_i32_1 = arith.constant 0 : i32
    return %arg0, %c0_i32, %c0_i32_0 : i32, i32, i32
  }
  func.func @transform_1(%arg0: i32) -> (i32, i32, i32) {
    %c0_i32 = arith.constant 0 : i32
    %c0_i32_0 = arith.constant 0 : i32
    %c0_i32_1 = arith.constant 0 : i32
    return %arg0, %c0_i32, %c0_i32_0 : i32, i32, i32
  }
  func.func @transform_2(%arg0: i32) -> (i32, i32, i32) {
    %c0_i32 = arith.constant 0 : i32
    %c0_i32_0 = arith.constant 0 : i32
    %c0_i32_1 = arith.constant 0 : i32
    %c0_i32_2 = arith.constant 0 : i32
    return %c0_i32, %c0_i32_0, %c0_i32_1 : i32, i32, i32
  }
  func.func @transform_3(%arg0: i32) -> (i32, i32, i32) {
    %c0_i32 = arith.constant 0 : i32
    %c0_i32_0 = arith.constant 0 : i32
    %c0_i32_1 = arith.constant 0 : i32
    %c0_i32_2 = arith.constant 0 : i32
    return %c0_i32, %c0_i32_0, %c0_i32_1 : i32, i32, i32
  }
  func.func @transform_4(%arg0: i32) -> (i32, i32, i32) {
    %c0_i32 = arith.constant 0 : i32
    %c0_i32_0 = arith.constant 0 : i32
    %c0_i32_1 = arith.constant 0 : i32
    return %arg0, %c0_i32, %c0_i32_0 : i32, i32, i32
  }
}

</mosaic_0001>

<bundles_post_ra>
// kernel: upblock_forward.1
= control target key start
LH: loop header
LB: loop body
LE: loop exit
PB: predicated region body
PF: predicated region fallthrough
CT: control target
= control target key end

     0   :  { %vm78_vm0 = vcmask 1043456   ;;  %s2612_s21 = smov 112   ;;  %s2613_s22 = smov 48   ;;  %vm90_vm1 = vcmask 130048   ;;  %vm156_vm2 = vcmask 64512   ;;  %v17_v23 = vlaneseq  ;;  %s3190_s0 = inlined_call_operand.vmem [shape: f32[2,4,256], index: 0, kind: input, shape index: {}]   ;;  %s3191_s1 = inlined_call_operand.vmem [shape: f32[2,4,256], index: 1, kind: input, shape index: {}]   ;;  %s3192_s2 = inlined_call_operand.vmem [shape: f32[9,4,8], index: 2, kind: input, shape index: {}]   ;;  %s3193_s3 = inlined_call_operand.vmem [shape: f32[9,4,4], index: 3, kind: input, shape index: {}]   ;;  %s3194_s4 = inlined_call_operand.vmem [shape: f32[2,4,256], index: 4, kind: output, shape index: {}]  }
   0x1   :  { %v63_v0 = vld [vmem:[%s3190_s0] sm:$0xff]  ;;  %v2421_v4 = vld [vmem:[%s3190_s0 + $0x8] sm:$0xff]  ;;  %s2614_s23 = smov 16   ;;  %s2615_s0 = smov 97   ;;  %vm124_vm4 = vcmask 1039360   ;;  %vm111_vm6 = vcmask 7168  }
   0x2   :  { %66 = vst [vmem:[#allocation1] ss:$2 sm:$0xff] %v63_v0  ;;  %v64_v1 = vld [vmem:[%s3191_s1] sm:$0xff]  ;;  %s2616_s24 = smov 127   ;;  %s2617_s25 = smov 1   ;;  %v18_v25 = vand.u32 127, %v17_v23 }
   0x3   :  { %s2618_s26 = smov 31   ;;  %v2351_v21 = vld [vmem:[%s3192_s2 + $0x4] sm:$0xf]  ;;  %vm133_vm7 = vcmask 252928   ;;  %vm301_vm11 = vcmask 916480   ;;  %s2619_s29 = smov 96  }
   0x4   :  { %v25_v26 = vand.u32 15, %v18_v25  ;;  %v20_v27 = vadd.s32 256, %v18_v25  ;;  %v19_v28 = vadd.s32 128, %v18_v25  ;;  %v153_v63 = vld [vmem:[%s3192_s2] sm:$0xf]  ;;  %vm476_vm13 = vcmask 785408  }
   0x5   :  { %v2356_v0 = vld [vmem:[%s3192_s2 + $0x8] sm:$0xf] }
   0x6   :  { %vm2682_vm3 = vcmp.eq.s32.totalorder %v25_v26, 0  ;;  %vm2686_vm5 = vcmp.eq.s32.totalorder %v25_v26, 15  ;;  %v39_v33 = vand.u32 15, %v20_v27  ;;  %v32_v38 = vand.u32 15, %v19_v28  ;;  %v2368_v27 = vld [vmem:[%s3192_s2 + $0x18] sm:$0xf] }
   0x7   :  { %v2458_v60 = vld [vmem:[%s3193_s3 + $0x8] sm:$0xf] }
   0x8   :  { %vm2700_vm8 = vcmp.eq.s32.totalorder %v39_v33, 0  ;;  %vm2704_vm9 = vcmp.eq.s32.totalorder %v32_v38, 0  ;;  %vm2708_vm10 = vcmp.eq.s32.totalorder %v32_v38, 15  ;;  %vm2727_vm12 = vcmp.eq.s32.totalorder %v39_v33, 15 }
   0x9   :  { %v67_v2 = vld.sshfl [vmem:[#allocation1] sm:$0xff pattern:$0x75316420]  ;;  %v68_v3 = vld.sshfl [vmem:[#allocation1 + $0x8] sm:$0xff pattern:$0x75316420] }
   0xa   :  { %73 = vst [vmem:[#allocation1 + $0x1] ss:$2 sm:$0xff] %v64_v1  ;;  %v2362_v1 = vld [vmem:[%s3192_s2 + $0x10] sm:$0xf] }
  0x11   :  { %v74_v5 = vld.sshfl [vmem:[#allocation1] sm:$0xff pattern:$0x75316420]  ;;  %v75_v6 = vld.sshfl [vmem:[#allocation1 + $0x8] sm:$0xff pattern:$0x75316420] }
  0x12   :  { %v79_v7 = vsel %vm78_vm0, %v67_v2, %v74_v5  ;;  %v80_v8 = vsel %vm78_vm0, %v68_v3, %v75_v6  ;;  %1227 = vst [vmem:[#allocation1] ss:$2 sm:$0xff] %v2421_v4 }
  0x13   :  { %82 = vrot.lane.b32.xlu0 %v79_v7, %s2612_s21  ;;  %95 = vrot.lane.b32.xlu1 %v80_v8, %s2613_s22  ;;  %v2502_v9 = vpack.i.bf16 %v80_v8, %v79_v7 }
  0x1b   :  { %2503 = vrot.lane.b32.xlu0 %v2502_v9, %s2614_s23 }
  0x85   :  { %v83_v10 = vpop.permute.xlu0 %82  ;;  %v96_v12 = vpop.permute.xlu1 %95 }
  0x8d   :  { %v2504_v11 = vpop.permute.xlu0 %2503 }
  0x8e   :  { %v2506_v13 = vunpack.i.h.bf16 %v2504_v11  ;;  %v2505_v14 = vunpack.i.l.bf16 %v2504_v11 }
  0x90   :  { %v2660_v15 = vsel %vm90_vm1, %v83_v10, %v2505_v14  ;;  %v99_v16 = vsel %vm90_vm1, %v2506_v13, %v96_v12  ;;  %v91_v17 = vsel %vm90_vm1, %v2505_v14, %v2506_v13  ;;  %v2359_v13 = vld [vmem:[%s3192_s2 + $0xc] sm:$0xf] }
  0x91   :  { %101 = vrot.lane.b32.xlu1 %v99_v16, %s2615_s0  ;;  %175 = vmatpush.msra.mxu0 %v2660_v15  ;;  %v2512_v18 = vpack.i.bf16 %v91_v17, %v2660_v15  ;;  %v2667_v19 = vpack.i.bf16 %v99_v16, %v91_v17 }
  0x92   :  { %195 = vmatpush.msra.mxu1 %v91_v17  ;;  %2352 = vmatmul.msk.f32.vlgmr.msra.gmra.mxu0 %vm156_vm2, %v2351_v21 }
  0x93   :  { %2513 = vrot.lane.b32.xlu0 %v2512_v18, %s2616_s24  ;;  %2508 = vrot.lane.b32.xlu2 %v2512_v18, %s2617_s25 }
  0x94   :  { %2353 = vmatmul.msk.f32.vlgmr.msra.gmra.mxu1 %vm156_vm2, %v2351_v21 }
  0x99   :  { %122 = vrot.lane.b32.xlu1 %v99_v16, %s2616_s24 }
  0x9b   :  { %109 = vrot.lane.b32.xlu2 %v99_v16, %s2617_s25 }
  0xa3   :  { %130 = vrot.lane.b32.xlu2 %v2660_v15, %s2618_s26 }
  0xab   :  { %2518 = vrot.lane.b32.xlu2 %v2667_v19, %s2612_s21 }
  0xed   :  { %v2509_v20 = vpop.permute.xlu2 %2508 }
  0xee   :  { %v2510_v34 = vunpack.i.l.bf16 %v2509_v20  ;;  %v2511_v39 = vunpack.i.h.bf16 %v2509_v20 }
  0xf0   :  { %v112_v53 = vsel %vm111_vm6, %v2510_v34, %v2511_v39 }
  0xf5   :  { %v110_v22 = vpop.permute.xlu2 %109 }
  0xf6   :  { %v113_v50 = vsel %vm111_vm6, %v2511_v39, %v110_v22 }
  0xfd   :  { %v131_v24 = vpop.permute.xlu2 %130 }
 0x103   :  { %v102_v29 = vpop.permute.xlu1 %101 }
 0x104   :  { %v117_v40 = vsel %vm111_vm6, %v102_v29, %v2510_v34 }
 0x105   :  { %v2514_v30 = vpop.permute.xlu0 %2513  ;;  %v2690_v37 = vpop.permute.xlu2 %2518 }
 0x106   :  { %v2516_v35 = vunpack.i.h.bf16 %v2514_v30  ;;  %v2515_v36 = vunpack.i.l.bf16 %v2514_v30  ;;  %v2521_v42 = vunpack.i.h.bf16 %v2690_v37  ;;  %v2520_v43 = vunpack.i.l.bf16 %v2690_v37  ;;  %v2371_v37 = vld [vmem:[%s3192_s2 + $0x1c] sm:$0xf] }
 0x108   :  { %v125_v41 = vsel %vm124_vm4, %v2515_v36, %v2516_v35  ;;  %v360_v57 = vsel %vm301_vm11, %v2520_v43, %v2521_v42 }
 0x109   :  { %v141_v44 = vsel %vm2682_vm3, %v125_v41, %v117_v40  ;;  %v150_v45 = vsel %vm2686_vm5, %v117_v40, %v125_v41  ;;  %v2374_v40 = vld [vmem:[%s3192_s2 + $0x20] sm:$0xf] }
 0x10a   :  { %218 = vmatpush.msra.mxu2 %v141_v44  ;;  %263 = vmatpush.msrb.mxu0 %v150_v45 }
 0x10b   :  { %v123_v49 = vpop.permute.xlu1 %122  ;;  %2354 = vmatmul.msk.f32.vlgmr.msra.gmra.mxu2 %vm156_vm2, %v153_v63  ;;  %2357 = vmatmul.msk.f32.vlgmr.msrb.gmra.mxu0 %vm156_vm2, %v2356_v0 }
 0x10c   :  { %v126_v51 = vsel %vm124_vm4, %v2516_v35, %v123_v49  ;;  %v134_v52 = vsel %vm133_vm7, %v123_v49, %v131_v24  ;;  %v2365_v24 = vld [vmem:[%s3192_s2 + $0x14] sm:$0xf] }
 0x10d   :  { %v143_v54 = vsel %vm2700_vm8, %v134_v52, %v113_v50  ;;  %v142_v55 = vsel %vm2704_vm9, %v126_v51, %v112_v53  ;;  %v151_v56 = vsel %vm2708_vm10, %v112_v53, %v126_v51  ;;  %v152_v62 = vsel %vm2727_vm12, %v113_v50, %v134_v52  ;;  %v2422_v52 = vld [vmem:[%s3191_s1 + $0x8] sm:$0xff] }
 0x10e   :  { %238 = vmatpush.msra.mxu3 %v142_v55  ;;  %283 = vmatpush.msrb.mxu1 %v151_v56  ;;  %v2527_v58 = vpack.i.bf16 %v2660_v15, %v143_v54  ;;  %v2542_v59 = vpack.i.bf16 %v142_v55, %v141_v44  ;;  %v2552_v61 = vpack.i.bf16 %v151_v56, %v150_v45  ;;  %v1228_v54 = vld.sshfl [vmem:[#allocation1] sm:$0xff pattern:$0x75316420]  ;;  %v1229_v55 = vld.sshfl [vmem:[#allocation1 + $0x8] sm:$0xff pattern:$0x75316420] }
 0x10f   :  { %2355 = vmatmul.msk.f32.vlgmr.msra.gmra.mxu3 %vm156_vm2, %v153_v63  ;;  %2358 = vmatmul.msk.f32.vlgmr.msrb.gmra.mxu1 %vm156_vm2, %v2356_v0  ;;  %1234 = vst [vmem:[#allocation1 + $0x1] ss:$2 sm:$0xff] %v2422_v52 }
 0x110   :  { %401 = vmatpush.msra.mxu1 %v360_v57  ;;  %2528 = vrot.lane.b32.xlu1 %v2527_v58, %s2612_s21 }
 0x111   :  { %2543 = vrot.lane.b32.xlu2 %v2542_v59, %s2619_s29  ;;  %2523 = vrot.lane.b32.xlu0 %v2542_v59, %s2612_s21  ;;  %v197_v44 = vpop.f32.mrf.mxu1 }
 0x117   :  { %2364 = vmatmul.msk.f32.vlgmr.msra.gmra.mxu1 %vm156_vm2, %v2362_v1 }
 0x118   :  { %417 = vrot.lane.b32.xlu1 %v152_v62, %s2612_s21 }
 0x119   :  { %2553 = vrot.lane.b32.xlu2 %v2552_v61, %s2619_s29  ;;  %2533 = vrot.lane.b32.xlu0 %v2552_v61, %s2612_s21 }
 0x120   :  { %2538 = vrot.lane.b32.xlu1 %v2667_v19, %s2619_s29 }
 0x121   :  { %2548 = vrot.lane.b32.xlu0 %v2527_v58, %s2619_s29 }
 0x129   :  { %589 = vrot.lane.b32.xlu0 %v152_v62, %s2619_s29 }
 0x16b   :  { %v2544_v2 = vpop.permute.xlu2 %2543 }
 0x16c   :  { %v2546_v8 = vunpack.i.h.bf16 %v2544_v2  ;;  %v2545_v9 = vunpack.i.l.bf16 %v2544_v2 }
 0x16e   :  { %v477_v18 = vsel %vm476_vm13, %v2545_v9, %v2546_v8 }
 0x173   :  { %v2554_v4 = vpop.permute.xlu2 %2553 }
 0x174   :  { %v2556_v14 = vunpack.i.h.bf16 %v2554_v4  ;;  %v2555_v15 = vunpack.i.l.bf16 %v2554_v4 }
 0x176   :  { %v591_v19 = vsel %vm476_vm13, %v2555_v15, %v2556_v14 }
 0x182   :  { %v2529_v3 = vpop.permute.xlu1 %2528 }
 0x183   :  { %v2531_v5 = vunpack.i.h.bf16 %v2529_v3  ;;  %v2530_v6 = vunpack.i.l.bf16 %v2529_v3  ;;  %v2524_v7 = vpop.permute.xlu0 %2523 }
 0x184   :  { %v2526_v10 = vunpack.i.h.bf16 %v2524_v7  ;;  %v2525_v11 = vunpack.i.l.bf16 %v2524_v7 }
 0x185   :  { %v359_v12 = vsel %vm301_vm11, %v2531_v5, %v2520_v43  ;;  %v177_v43 = vpop.f32.mrf.mxu0 }
 0x186   :  { %v302_v16 = vsel %vm301_vm11, %v2525_v11, %v2526_v10  ;;  %v303_v17 = vsel %vm301_vm11, %v2526_v10, %v2530_v6  ;;  %381 = vmatpush.msra.mxu0 %v359_v12 }
 0x187   :  { %324 = vmatpush.msrb.mxu2 %v302_v16  ;;  %344 = vmatpush.msrb.mxu3 %v303_v17 }
 0x188   :  { %2360 = vmatmul.msk.f32.vlgmr.msrb.gmra.mxu2 %vm156_vm2, %v2359_v13  ;;  %2361 = vmatmul.msk.f32.vlgmr.msrb.gmra.mxu3 %vm156_vm2, %v2359_v13 }
 0x189   :  { %499 = vmatpush.msrb.mxu0 %v477_v18 }
 0x18a   :  { %2363 = vmatmul.msk.f32.vlgmr.msra.gmra.mxu0 %vm156_vm2, %v2362_v1  ;;  %v418_v20 = vpop.permute.xlu1 %417 }
 0x18b   :  { %613 = vmatpush.msra.mxu0 %v591_v19  ;;  %v2534_v21 = vpop.permute.xlu0 %2533 }
 0x18c   :  { %v2536_v22 = vunpack.i.h.bf16 %v2534_v21  ;;  %v2535_v23 = vunpack.i.l.bf16 %v2534_v21  ;;  %v285_v49 = vpop.f32.mrf.mxu1 }
 0x18d   :  { %v265_v45 = vpop.f32.mrf.mxu0 }
 0x18e   :  { %v419_v25 = vsel %vm301_vm11, %v2535_v23, %v2536_v22  ;;  %v420_v26 = vsel %vm301_vm11, %v2536_v22, %v418_v20  ;;  %v220_v51 = vpop.f32.mrf.mxu2  ;;  %v1235_v23 = vld.sshfl [vmem:[#allocation1] sm:$0xff pattern:$0x75316420] }
 0x18f   :  { %441 = vmatpush.msra.mxu2 %v419_v25  ;;  %461 = vmatpush.msra.mxu3 %v420_v26  ;;  %v221_v56 = vadd.f32 %v220_v51, %v177_v43  ;;  %v1239_v26 = vsel %vm78_vm0, %v1228_v54, %v1235_v23  ;;  %v2377_v54 = vld [vmem:[%s3193_s3 + $0x4] sm:$0xf] }
 0x190   :  { %2366 = vmatmul.msk.f32.vlgmr.msra.gmra.mxu2 %vm156_vm2, %v2365_v24  ;;  %2367 = vmatmul.msk.f32.vlgmr.msra.gmra.mxu3 %vm156_vm2, %v2365_v24  ;;  %v1236_v24 = vld.sshfl [vmem:[#allocation1 + $0x8] sm:$0xff pattern:$0x75316420] }
 0x191   :  { %v288_v62 = vadd.f32 %v265_v45, %v221_v56 }
 0x192   :  { %v2539_v28 = vpop.permute.xlu1 %2538  ;;  %2369 = vmatmul.msk.f32.vlgmr.msrb.gmra.mxu0 %vm156_vm2, %v2368_v27  ;;  %v240_v50 = vpop.f32.mrf.mxu3 }
 0x193   :  { %v2541_v29 = vunpack.i.h.bf16 %v2539_v28  ;;  %v2540_v30 = vunpack.i.l.bf16 %v2539_v28  ;;  %v2549_v33 = vpop.permute.xlu0 %2548  ;;  %v241_v58 = vadd.f32 %v240_v50, %v197_v44 }
 0x194   :  { %v2551_v34 = vunpack.i.h.bf16 %v2549_v33  ;;  %v2550_v35 = vunpack.i.l.bf16 %v2549_v33  ;;  %v403_v57 = vpop.f32.mrf.mxu1 }
 0x195   :  { %v535_v36 = vsel %vm476_vm13, %v2540_v30, %v2541_v29  ;;  %v289_v63 = vadd.f32 %v285_v49, %v241_v58 }
 0x196   :  { %v478_v38 = vsel %vm476_vm13, %v2546_v8, %v2550_v35  ;;  %v534_v39 = vsel %vm476_vm13, %v2551_v34, %v2540_v30  ;;  %576 = vmatpush.msrb.mxu3 %v535_v36 }
 0x197   :  { %519 = vmatpush.msrb.mxu1 %v478_v38  ;;  %556 = vmatpush.msrb.mxu2 %v534_v39 }
 0x198   :  { %2370 = vmatmul.msk.f32.vlgmr.msrb.gmra.mxu1 %vm156_vm2, %v2368_v27  ;;  %2372 = vmatmul.msk.f32.vlgmr.msrb.gmra.mxu2 %vm156_vm2, %v2371_v37  ;;  %v1240_v27 = vsel %vm78_vm0, %v1229_v55, %v1236_v24 }
 0x199   :  { %2373 = vmatmul.msk.f32.vlgmr.msrb.gmra.mxu3 %vm156_vm2, %v2371_v37  ;;  %v2557_v28 = vpack.i.bf16 %v1240_v27, %v1239_v26 }
 0x19a   :  { %2375 = vmatmul.msk.f32.vlgmr.msra.gmra.mxu0 %vm156_vm2, %v2374_v40 }
 0x19b   :  { %v590_v41 = vpop.permute.xlu0 %589 }
 0x19c   :  { %v592_v42 = vsel %vm476_vm13, %v2556_v14, %v590_v41 }
 0x19d   :  { %633 = vmatpush.msra.mxu1 %v592_v42 }
 0x1a0   :  { %2376 = vmatmul.msk.f32.vlgmr.msra.gmra.mxu1 %vm156_vm2, %v2374_v40 }
 0x207   :  { %v383_v53 = vpop.f32.mrf.mxu0 }
 0x20b   :  { %v326_v59 = vpop.f32.mrf.mxu2  ;;  %v346_v61 = vpop.f32.mrf.mxu3 }
 0x20c   :  { %v349_v0 = vadd.f32 %v326_v59, %v288_v62  ;;  %v350_v1 = vadd.f32 %v346_v61, %v289_v63 }
 0x20e   :  { %v406_v5 = vadd.f32 %v383_v53, %v349_v0  ;;  %v407_v6 = vadd.f32 %v403_v57, %v350_v1 }
 0x20f   :  { %v501_v2 = vpop.f32.mrf.mxu0 }
 0x213   :  { %v443_v3 = vpop.f32.mrf.mxu2  ;;  %v463_v4 = vpop.f32.mrf.mxu3 }
 0x214   :  { %v466_v8 = vadd.f32 %v443_v3, %v406_v5  ;;  %v467_v9 = vadd.f32 %v463_v4, %v407_v6 }
 0x215   :  { %v521_v7 = vpop.f32.mrf.mxu1 }
 0x216   :  { %v524_v10 = vadd.f32 %v501_v2, %v466_v8  ;;  %v525_v11 = vadd.f32 %v521_v7, %v467_v9 }
 0x217   :  { %v615_v13 = vpop.f32.mrf.mxu0 }
 0x21b   :  { %v558_v12 = vpop.f32.mrf.mxu2 }
 0x21c   :  { %v581_v14 = vadd.f32 %v558_v12, %v524_v10  ;;  %v578_v15 = vpop.f32.mrf.mxu3 }
 0x21d   :  { %v582_v16 = vadd.f32 %v578_v15, %v525_v11  ;;  %v635_v17 = vpop.f32.mrf.mxu1 }
 0x21e   :  { %v638_v18 = vadd.f32 %v615_v13, %v581_v14 }
 0x21f   :  { %v639_v19 = vadd.f32 %v635_v17, %v582_v16 }
 0x220   :  { %v642_v20 = vmul.f32 0.1, %v638_v18  ;;  %vm640_vm14 = vcmp.ge.f32.partialorder %v638_v18, 0.0 }
 0x221   :  { %v643_v21 = vmul.f32 0.1, %v639_v19  ;;  %vm641_vm15 = vcmp.ge.f32.partialorder %v639_v19, 0.0 }
 0x222   :  { %v644_v22 = vsel %vm640_vm14, %v638_v18, %v642_v20  ;;  %vm704_vm14 = vcmask 31744  }
 0x223   :  { %651 = vrot.lane.b32.xlu2 %v644_v22, %s2614_s23  ;;  %647 = vrot.lane.b32.xlu1 %v644_v22, %s2612_s21  ;;  %v645_v25 = vsel %vm641_vm15, %v639_v19, %v643_v21 }
 0x224   :  { %653 = vrot.lane.b32.xlu0 %v645_v25, %s2614_s23 }
 0x22b   :  { %658 = vrot.lane.b32.xlu1 %v645_v25, %s2613_s22  ;;  %1242 = vrot.lane.b32.xlu2 %v1239_v26, %s2612_s21 }
 0x22c   :  { %2558 = vrot.lane.b32.xlu0 %v2557_v28, %s2614_s23 }
 0x233   :  { %1254 = vrot.lane.b32.xlu1 %v1240_v27, %s2613_s22 }
 0x27d   :  { %v652_v29 = vpop.permute.xlu2 %651 }
 0x285   :  { %v1243_v43 = vpop.permute.xlu2 %1242 }
 0x295   :  { %v648_v30 = vpop.permute.xlu1 %647 }
 0x296   :  { %v661_v33 = vsel %vm90_vm1, %v648_v30, %v652_v29  ;;  %v654_v34 = vpop.permute.xlu0 %653 }
 0x297   :  { %v655_v35 = vsel %vm90_vm1, %v652_v29, %v654_v34  ;;  %2378 = vmatpush.msk.msra.mxu2 %vm78_vm0, %v661_v33  ;;  %668 = vrot.lane.b32.xlu0 %v661_v33, %s2617_s25 }
 0x298   :  { %670 = vrot.lane.b32.xlu1 %v655_v35, %s2617_s25  ;;  %2380 = vmatpush.msk.msra.mxu3 %vm78_vm0, %v655_v35 }
 0x299   :  { %2379 = vmatmul.msk.f32.vlgmr.msra.gmra.mxu2 %vm704_vm14, %v2377_v54  ;;  %2381 = vmatmul.msk.f32.vlgmr.msra.gmra.mxu3 %vm704_vm14, %v2377_v54 }
 0x29d   :  { %v659_v36 = vpop.permute.xlu1 %658 }
 0x29e   :  { %v662_v37 = vsel %vm90_vm1, %v654_v34, %v659_v36  ;;  %v2559_v38 = vpop.permute.xlu0 %2558 }
 0x29f   :  { %680 = vrot.lane.b32.xlu0 %v661_v33, %s2616_s24  ;;  %664 = vrot.lane.b32.xlu2 %v662_v37, %s2615_s0  ;;  %v2561_v39 = vunpack.i.h.bf16 %v2559_v38  ;;  %v2560_v40 = vunpack.i.l.bf16 %v2559_v38 }
 0x2a0   :  { %682 = vrot.lane.b32.xlu1 %v655_v35, %s2616_s24 }
 0x2a1   :  { %v2821_v44 = vsel %vm90_vm1, %v2560_v40, %v2561_v39  ;;  %v2824_v45 = vsel %vm90_vm1, %v1243_v43, %v2560_v40 }
 0x2a2   :  { %v2567_v49 = vpack.i.bf16 %v2821_v44, %v2824_v45 }
 0x2a5   :  { %v1255_v41 = vpop.permute.xlu1 %1254 }
 0x2a6   :  { %v2814_v42 = vsel %vm90_vm1, %v2561_v39, %v1255_v41  ;;  %v701_v41 = vld [vmem:[%s3193_s3] sm:$0xf] }
 0x2a7   :  { %691 = vrot.lane.b32.xlu0 %v661_v33, %s2618_s26  ;;  %672 = vrot.lane.b32.xlu2 %v662_v37, %s2617_s25  ;;  %v2582_v36 = vpack.i.bf16 %v2814_v42, %v2821_v44 }
 0x2a8   :  { %1260 = vrot.lane.b32.xlu1 %v2814_v42, %s2615_s0 }
 0x2af   :  { %684 = vrot.lane.b32.xlu2 %v662_v37, %s2616_s24  ;;  %1268 = vrot.lane.b32.xlu0 %v2814_v42, %s2617_s25 }
 0x2b0   :  { %2568 = vrot.lane.b32.xlu1 %v2567_v49, %s2616_s24 }
 0x2b7   :  { %1287 = vrot.lane.b32.xlu0 %v2824_v45, %s2618_s26  ;;  %2563 = vrot.lane.b32.xlu2 %v2567_v49, %s2617_s25  ;;  %v2396_v49 = vld [vmem:[%s3193_s3 + $0x10] sm:$0xf] }
 0x2b8   :  { %916 = vrot.lane.b32.xlu1 %v661_v33, %s2612_s21 }
 0x2bf   :  { %920 = vrot.lane.b32.xlu0 %v662_v37, %s2612_s21  ;;  %1280 = vrot.lane.b32.xlu2 %v2814_v42, %s2616_s24  ;;  %v2386_v42 = vld [vmem:[%s3193_s3 + $0x8] sm:$0xf] }
 0x2c0   :  { %1094 = vrot.lane.b32.xlu1 %v661_v33, %s2619_s29 }
 0x2c7   :  { %1098 = vrot.lane.b32.xlu0 %v662_v37, %s2619_s29  ;;  %918 = vrot.lane.b32.xlu2 %v655_v35, %s2612_s21 }
 0x2cf   :  { %1096 = vrot.lane.b32.xlu2 %v655_v35, %s2619_s29 }
 0x2f9   :  { %v665_v50 = vpop.permute.xlu2 %664 }
 0x301   :  { %v673_v51 = vpop.permute.xlu2 %672 }
 0x309   :  { %v669_v52 = vpop.permute.xlu0 %668  ;;  %v685_v55 = vpop.permute.xlu2 %684 }
 0x30a   :  { %v671_v53 = vpop.permute.xlu1 %670  ;;  %v679_v59 = vsel %vm111_vm6, %v665_v50, %v669_v52 }
 0x30b   :  { %v674_v58 = vsel %vm111_vm6, %v669_v52, %v671_v53  ;;  %v675_v5 = vsel %vm111_vm6, %v671_v53, %v673_v51 }
 0x311   :  { %v681_v56 = vpop.permute.xlu0 %680  ;;  %v2564_v3 = vpop.permute.xlu2 %2563 }
 0x312   :  { %v683_v57 = vpop.permute.xlu1 %682  ;;  %v2566_v19 = vunpack.i.h.bf16 %v2564_v3  ;;  %v2565_v20 = vunpack.i.l.bf16 %v2564_v3 }
 0x313   :  { %v687_v61 = vsel %vm124_vm4, %v683_v57, %v685_v55  ;;  %v686_v62 = vsel %vm124_vm4, %v681_v56, %v683_v57 }
 0x314   :  { %v696_v63 = vsel %vm2704_vm9, %v687_v61, %v674_v58  ;;  %v699_v0 = vsel %vm2708_vm10, %v674_v58, %v687_v61  ;;  %v695_v1 = vsel %vm2682_vm3, %v686_v62, %v679_v59  ;;  %v698_v2 = vsel %vm2686_vm5, %v679_v59, %v686_v62  ;;  %v2401_v62 = vld [vmem:[%s3193_s3 + $0x14] sm:$0xf] }
 0x315   :  { %2382 = vmatpush.msk.msrb.mxu0 %vm78_vm0, %v695_v1  ;;  %2384 = vmatpush.msk.msrb.mxu1 %vm78_vm0, %v696_v63  ;;  %v1270_v24 = vsel %vm111_vm6, %v2565_v20, %v2566_v19 }
 0x316   :  { %2387 = vmatpush.msk.msrb.mxu2 %vm78_vm0, %v698_v2  ;;  %2389 = vmatpush.msk.msrb.mxu3 %vm78_vm0, %v699_v0 }
 0x317   :  { %857 = vrot.lane.b32.xlu1 %v695_v1, %s2612_s21  ;;  %859 = vrot.lane.b32.xlu2 %v696_v63, %s2612_s21 }
 0x318   :  { %2383 = vmatmul.msk.f32.vlgmr.msrb.gmra.mxu0 %vm704_vm14, %v701_v41  ;;  %2385 = vmatmul.msk.f32.vlgmr.msrb.gmra.mxu1 %vm704_vm14, %v701_v41 }
 0x319   :  { %v692_v4 = vpop.permute.xlu0 %691  ;;  %v1281_v9 = vpop.permute.xlu2 %1280  ;;  %2388 = vmatmul.msk.f32.vlgmr.msrb.gmra.mxu2 %vm704_vm14, %v2386_v42  ;;  %2390 = vmatmul.msk.f32.vlgmr.msrb.gmra.mxu3 %vm704_vm14, %v2386_v42 }
 0x31a   :  { %v694_v6 = vsel %vm133_vm7, %v685_v55, %v692_v4  ;;  %v1261_v7 = vpop.permute.xlu1 %1260  ;;  %v2391_v55 = vld [vmem:[%s3193_s3 + $0xc] sm:$0xf] }
 0x31b   :  { %v697_v8 = vsel %vm2700_vm8, %v694_v6, %v675_v5  ;;  %v700_v12 = vsel %vm2727_vm12, %v675_v5, %v694_v6  ;;  %v1275_v25 = vsel %vm111_vm6, %v1261_v7, %v2565_v20  ;;  %v2406_v6 = vld [vmem:[%s3193_s3 + $0x18] sm:$0xf]  ;;  %v2411_v7 = vld [vmem:[%s3193_s3 + $0x1c] sm:$0xf] }
 0x31c   :  { %861 = vrot.lane.b32.xlu0 %v697_v8, %s2612_s21 }
 0x31f   :  { %976 = vrot.lane.b32.xlu1 %v698_v2, %s2612_s21  ;;  %978 = vrot.lane.b32.xlu2 %v699_v0, %s2612_s21 }
 0x321   :  { %v1269_v10 = vpop.permute.xlu0 %1268  ;;  %v919_v14 = vpop.permute.xlu2 %918 }
 0x322   :  { %v2569_v11 = vpop.permute.xlu1 %2568  ;;  %v1271_v26 = vsel %vm111_vm6, %v2566_v19, %v1269_v10  ;;  %v2428_v19 = vld [vmem:[%s3192_s2 + $0x8] sm:$0xf] }
 0x323   :  { %v2571_v16 = vunpack.i.h.bf16 %v2569_v11  ;;  %v2570_v17 = vunpack.i.l.bf16 %v2569_v11 }
 0x324   :  { %980 = vrot.lane.b32.xlu0 %v700_v12, %s2612_s21 }
 0x325   :  { %v1282_v21 = vsel %vm124_vm4, %v2570_v17, %v2571_v16  ;;  %v1283_v22 = vsel %vm124_vm4, %v2571_v16, %v1281_v9 }
 0x326   :  { %v2894_v30 = vsel %vm2682_vm3, %v1282_v21, %v1275_v25  ;;  %v2898_v33 = vsel %vm2704_vm9, %v1283_v22, %v1270_v24  ;;  %v1294_v37 = vsel %vm2686_vm5, %v1275_v25, %v1282_v21  ;;  %v2913_v38 = vsel %vm2708_vm10, %v1270_v24, %v1283_v22 }
 0x327   :  { %1035 = vrot.lane.b32.xlu1 %v695_v1, %s2619_s29  ;;  %1037 = vrot.lane.b32.xlu2 %v696_v63, %s2619_s29  ;;  %v2572_v35 = vpack.i.bf16 %v2898_v33, %v2894_v30  ;;  %v2587_v39 = vpack.i.bf16 %v2913_v38, %v1294_v37 }
 0x329   :  { %v1288_v13 = vpop.permute.xlu0 %1287  ;;  %v1097_v43 = vpop.permute.xlu2 %1096 }
 0x32a   :  { %v917_v15 = vpop.permute.xlu1 %916  ;;  %v1290_v23 = vsel %vm133_vm7, %v1281_v9, %v1288_v13 }
 0x32b   :  { %v922_v18 = vsel %vm301_vm11, %v917_v15, %v919_v14  ;;  %v1293_v28 = vsel %vm2700_vm8, %v1290_v23, %v1271_v26  ;;  %v1296_v40 = vsel %vm2727_vm12, %v1271_v26, %v1290_v23 }
 0x32c   :  { %2397 = vmatpush.msk.msra.mxu2 %vm78_vm0, %v922_v18  ;;  %1039 = vrot.lane.b32.xlu0 %v697_v8, %s2619_s29  ;;  %v2577_v34 = vpack.i.bf16 %v2824_v45, %v1293_v28  ;;  %v1297_v18 = vld [vmem:[%s3192_s2] sm:$0xf] }
 0x32d   :  { %2398 = vmatmul.msk.f32.vlgmr.msra.gmra.mxu2 %vm704_vm14, %v2396_v49 }
 0x32f   :  { %1153 = vrot.lane.b32.xlu1 %v698_v2, %s2619_s29  ;;  %1155 = vrot.lane.b32.xlu2 %v699_v0, %s2619_s29 }
 0x331   :  { %v921_v27 = vpop.permute.xlu0 %920 }
 0x332   :  { %v923_v29 = vsel %vm301_vm11, %v919_v14, %v921_v27  ;;  %v1095_v52 = vpop.permute.xlu1 %1094 }
 0x333   :  { %2399 = vmatpush.msk.msra.mxu3 %vm78_vm0, %v923_v29  ;;  %v1100_v0 = vsel %vm476_vm13, %v1095_v52, %v1097_v43  ;;  %v2437_v52 = vld [vmem:[%s3192_s2 + $0x14] sm:$0xf] }
 0x334   :  { %1157 = vrot.lane.b32.xlu0 %v700_v12, %s2619_s29  ;;  %2400 = vmatmul.msk.f32.vlgmr.msra.gmra.mxu3 %vm704_vm14, %v2396_v49  ;;  %v2423_v12 = vld [vmem:[%s3192_s2 + $0x4] sm:$0xf] }
 0x337   :  { %2578 = vrot.lane.b32.xlu2 %v2577_v34, %s2612_s21  ;;  %2573 = vrot.lane.b32.xlu1 %v2572_v35, %s2612_s21 }
 0x339   :  { %v1099_v53 = vpop.permute.xlu0 %1098 }
 0x33a   :  { %v1101_v4 = vsel %vm476_vm13, %v1097_v43, %v1099_v53 }
 0x33c   :  { %2583 = vrot.lane.b32.xlu0 %v2582_v36, %s2612_s21 }
 0x33f   :  { %1554 = vrot.lane.b32.xlu2 %v1296_v40, %s2612_s21  ;;  %2588 = vrot.lane.b32.xlu1 %v2587_v39, %s2612_s21 }
 0x344   :  { %2593 = vrot.lane.b32.xlu0 %v2572_v35, %s2619_s29  ;;  %v2434_v35 = vld [vmem:[%s3192_s2 + $0x10] sm:$0xf] }
 0x347   :  { %2603 = vrot.lane.b32.xlu2 %v2582_v36, %s2619_s29  ;;  %2598 = vrot.lane.b32.xlu1 %v2577_v34, %s2619_s29 }
 0x34c   :  { %2608 = vrot.lane.b32.xlu0 %v2587_v39, %s2619_s29 }
 0x34f   :  { %1722 = vrot.lane.b32.xlu1 %v1296_v40, %s2619_s29 }
 0x371   :  { %v860_v50 = vpop.permute.xlu2 %859 }
 0x379   :  { %v979_v51 = vpop.permute.xlu2 %978 }
 0x381   :  { %v1038_v56 = vpop.permute.xlu2 %1037 }
 0x389   :  { %v858_v54 = vpop.permute.xlu1 %857  ;;  %v1156_v1 = vpop.permute.xlu2 %1155 }
 0x38a   :  { %v863_v57 = vsel %vm301_vm11, %v858_v54, %v860_v50 }
 0x38b   :  { %2392 = vmatpush.msk.msra.mxu0 %vm78_vm0, %v863_v57 }
 0x38c   :  { %2393 = vmatmul.msk.f32.vlgmr.msra.gmra.mxu0 %vm704_vm14, %v2391_v55 }
 0x38e   :  { %v862_v58 = vpop.permute.xlu0 %861 }
 0x38f   :  { %v864_v59 = vsel %vm301_vm11, %v860_v50, %v862_v58 }
 0x390   :  { %2394 = vmatpush.msk.msra.mxu1 %vm78_vm0, %v864_v59 }
 0x391   :  { %v977_v61 = vpop.permute.xlu1 %976  ;;  %2395 = vmatmul.msk.f32.vlgmr.msra.gmra.mxu1 %vm704_vm14, %v2391_v55  ;;  %v2579_v8 = vpop.permute.xlu2 %2578  ;;  %v2440_v55 = vld [vmem:[%s3192_s2 + $0x18] sm:$0xf] }
 0x392   :  { %v982_v63 = vsel %vm301_vm11, %v977_v61, %v979_v51  ;;  %v2580_v20 = vunpack.i.l.bf16 %v2579_v8  ;;  %v2581_v26 = vunpack.i.h.bf16 %v2579_v8 }
 0x393   :  { %2402 = vmatpush.msk.msrb.mxu0 %vm78_vm0, %v982_v63 }
 0x394   :  { %2403 = vmatmul.msk.f32.vlgmr.msrb.gmra.mxu0 %vm704_vm14, %v2401_v62 }
 0x395   :  { %2412 = vmatpush.msk.msra.mxu0 %vm78_vm0, %v1100_v0 }
 0x396   :  { %v981_v2 = vpop.permute.xlu0 %980 }
 0x397   :  { %1317 = vmatpush.msrb.mxu0 %v2824_v45  ;;  %v983_v3 = vsel %vm301_vm11, %v979_v51, %v981_v2 }
 0x398   :  { %2404 = vmatpush.msk.msrb.mxu1 %vm78_vm0, %v983_v3  ;;  %v2446_v3 = vld [vmem:[%s3192_s2 + $0x20] sm:$0xf] }
 0x399   :  { %v1036_v5 = vpop.permute.xlu1 %1035  ;;  %2405 = vmatmul.msk.f32.vlgmr.msrb.gmra.mxu1 %vm704_vm14, %v2401_v62  ;;  %v1555_v16 = vpop.permute.xlu2 %1554 }
 0x39a   :  { %v1041_v45 = vsel %vm476_vm13, %v1036_v5, %v1038_v56  ;;  %2414 = vmatpush.msk.msra.mxu1 %vm78_vm0, %v1101_v4  ;;  %v778_v5 = vpop.f32.mrf.mxu0 }
 0x39b   :  { %2407 = vmatpush.msk.msrb.mxu2 %vm78_vm0, %v1041_v45  ;;  %v749_v45 = vpop.f32.mrf.mxu3 }
 0x39c   :  { %1337 = vmatpush.msrb.mxu1 %v2821_v44  ;;  %2408 = vmatmul.msk.f32.vlgmr.msrb.gmra.mxu2 %vm704_vm14, %v2406_v6  ;;  %v2416_v44 = vld [vmem:[%s3193_s3 + $0x20] sm:$0xf] }
 0x39d   :  { %2413 = vmatmul.msk.f32.vlgmr.msra.gmra.mxu0 %vm704_vm14, %v2411_v7 }
 0x39e   :  { %1404 = vmatpush.msra.mxu0 %v1294_v37  ;;  %v1040_v9 = vpop.permute.xlu0 %1039 }
 0x39f   :  { %v1042_v10 = vsel %vm476_vm13, %v1038_v56, %v1040_v9 }
 0x3a0   :  { %2409 = vmatpush.msk.msrb.mxu3 %vm78_vm0, %v1042_v10 }
 0x3a1   :  { %v1154_v11 = vpop.permute.xlu1 %1153  ;;  %2410 = vmatmul.msk.f32.vlgmr.msrb.gmra.mxu3 %vm704_vm14, %v2406_v6  ;;  %2415 = vmatmul.msk.f32.vlgmr.msra.gmra.mxu1 %vm704_vm14, %v2411_v7  ;;  %v2604_v36 = vpop.permute.xlu2 %2603 }
 0x3a2   :  { %v1159_v13 = vsel %vm476_vm13, %v1154_v11, %v1156_v1  ;;  %1424 = vmatpush.msra.mxu1 %v2913_v38  ;;  %v2606_v41 = vunpack.i.h.bf16 %v2604_v36  ;;  %v2605_v42 = vunpack.i.l.bf16 %v2604_v36  ;;  %v729_v6 = vpop.f32.mrf.mxu2  ;;  %v798_v7 = vpop.f32.mrf.mxu1 }
 0x3a3   :  { %2417 = vmatpush.msk.msra.mxu2 %vm78_vm0, %v1159_v13 }
 0x3a4   :  { %2418 = vmatmul.msk.f32.vlgmr.msra.gmra.mxu2 %vm704_vm14, %v2416_v44  ;;  %v1669_v53 = vsel %vm476_vm13, %v2605_v42, %v2606_v41 }
 0x3a5   :  { %2424 = vmatmul.msk.f32.vlgmr.msrb.gmra.mxu0 %vm156_vm2, %v2423_v12  ;;  %1360 = vmatpush.msrb.mxu2 %v2894_v30  ;;  %v2431_v30 = vld [vmem:[%s3192_s2 + $0xc] sm:$0xf] }
 0x3a6   :  { %v1158_v14 = vpop.permute.xlu0 %1157 }
 0x3a7   :  { %v1160_v15 = vsel %vm476_vm13, %v1156_v1, %v1158_v14  ;;  %v2443_v1 = vld [vmem:[%s3192_s2 + $0x1c] sm:$0xf]  ;;  %v799_v14 = vadd.f32 %v798_v7, %v749_v45 }
 0x3a8   :  { %2419 = vmatpush.msk.msra.mxu3 %vm78_vm0, %v1160_v15 }
 0x3a9   :  { %v2574_v17 = vpop.permute.xlu1 %2573  ;;  %2420 = vmatmul.msk.f32.vlgmr.msra.gmra.mxu3 %vm704_vm14, %v2416_v44  ;;  %2425 = vmatmul.msk.f32.vlgmr.msrb.gmra.mxu1 %vm156_vm2, %v2423_v12  ;;  %v849_v44 = vpop.f32.mrf.mxu3  ;;  %v779_v12 = vadd.f32 %v778_v5, %v729_v6 }
 0x3aa   :  { %v2576_v21 = vunpack.i.h.bf16 %v2574_v17  ;;  %v2575_v22 = vunpack.i.l.bf16 %v2574_v17  ;;  %1380 = vmatpush.msrb.mxu3 %v2898_v33  ;;  %v829_v9 = vpop.f32.mrf.mxu2 }
 0x3ab   :  { %v852_v15 = vadd.f32 %v829_v9, %v779_v12 }
 0x3ac   :  { %2426 = vmatmul.msk.f32.vlgmr.msrb.gmra.mxu2 %vm156_vm2, %v1297_v18  ;;  %v1441_v23 = vsel %vm301_vm11, %v2575_v22, %v2576_v21  ;;  %v1442_v24 = vsel %vm301_vm11, %v2576_v21, %v2580_v20 }
 0x3ad   :  { %2429 = vmatmul.msk.f32.vlgmr.msra.gmra.mxu0 %vm156_vm2, %v2428_v19  ;;  %1463 = vmatpush.msra.mxu2 %v1441_v23 }
 0x3ae   :  { %1483 = vmatpush.msra.mxu3 %v1442_v24  ;;  %v2584_v25 = vpop.permute.xlu0 %2583 }
 0x3af   :  { %v2586_v27 = vunpack.i.h.bf16 %v2584_v25  ;;  %v2585_v28 = vunpack.i.l.bf16 %v2584_v25 }
 0x3b1   :  { %v2589_v29 = vpop.permute.xlu1 %2588  ;;  %2427 = vmatmul.msk.f32.vlgmr.msrb.gmra.mxu3 %vm156_vm2, %v1297_v18  ;;  %v1497_v33 = vsel %vm301_vm11, %v2581_v26, %v2585_v28  ;;  %v1498_v34 = vsel %vm301_vm11, %v2585_v28, %v2586_v27  ;;  %2430 = vmatmul.msk.f32.vlgmr.msra.gmra.mxu1 %vm156_vm2, %v2428_v19  ;;  %v853_v18 = vadd.f32 %v849_v44, %v799_v14 }
 0x3b2   :  { %v2591_v37 = vunpack.i.h.bf16 %v2589_v29  ;;  %v2590_v38 = vunpack.i.l.bf16 %v2589_v29  ;;  %1519 = vmatpush.msrb.mxu0 %v1497_v33  ;;  %1539 = vmatpush.msrb.mxu1 %v1498_v34 }
 0x3b4   :  { %2432 = vmatmul.msk.f32.vlgmr.msra.gmra.mxu2 %vm156_vm2, %v2431_v30  ;;  %v1556_v39 = vsel %vm301_vm11, %v2590_v38, %v2591_v37  ;;  %v1557_v40 = vsel %vm301_vm11, %v2591_v37, %v1555_v16  ;;  %v948_v16 = vpop.f32.mrf.mxu2 }
 0x3b5   :  { %2435 = vmatmul.msk.f32.vlgmr.msrb.gmra.mxu0 %vm156_vm2, %v2434_v35  ;;  %1578 = vmatpush.msrb.mxu2 %v1556_v39 }
 0x3b6   :  { %1598 = vmatpush.msrb.mxu3 %v1557_v40  ;;  %v2594_v43 = vpop.permute.xlu0 %2593 }
 0x3b7   :  { %v2596_v49 = vunpack.i.h.bf16 %v2594_v43  ;;  %v2595_v50 = vunpack.i.l.bf16 %v2594_v43  ;;  %v968_v20 = vpop.f32.mrf.mxu3 }
 0x3b9   :  { %v2599_v51 = vpop.permute.xlu1 %2598  ;;  %2433 = vmatmul.msk.f32.vlgmr.msra.gmra.mxu3 %vm156_vm2, %v2431_v30  ;;  %v1612_v54 = vsel %vm476_vm13, %v2595_v50, %v2596_v49  ;;  %2436 = vmatmul.msk.f32.vlgmr.msrb.gmra.mxu1 %vm156_vm2, %v2434_v35 }
 0x3ba   :  { %v2601_v56 = vunpack.i.h.bf16 %v2599_v51  ;;  %v2600_v57 = vunpack.i.l.bf16 %v2599_v51  ;;  %1710 = vmatpush.msra.mxu3 %v1669_v53  ;;  %1634 = vmatpush.msra.mxu0 %v1612_v54 }
 0x3bc   :  { %2438 = vmatmul.msk.f32.vlgmr.msrb.gmra.mxu2 %vm156_vm2, %v2437_v52  ;;  %v1613_v58 = vsel %vm476_vm13, %v2596_v49, %v2600_v57  ;;  %v1668_v59 = vsel %vm476_vm13, %v2601_v56, %v2605_v42 }
 0x3bd   :  { %2441 = vmatmul.msk.f32.vlgmr.msra.gmra.mxu0 %vm156_vm2, %v2440_v55  ;;  %1654 = vmatpush.msra.mxu1 %v1613_v58 }
 0x3be   :  { %1690 = vmatpush.msra.mxu2 %v1668_v59  ;;  %v2609_v61 = vpop.permute.xlu0 %2608 }
 0x3bf   :  { %v2611_v62 = vunpack.i.h.bf16 %v2609_v61  ;;  %v2610_v63 = vunpack.i.l.bf16 %v2609_v61 }
 0x3c1   :  { %v1723_v0 = vpop.permute.xlu1 %1722  ;;  %2439 = vmatmul.msk.f32.vlgmr.msrb.gmra.mxu3 %vm156_vm2, %v2437_v52  ;;  %v1724_v2 = vsel %vm476_vm13, %v2610_v63, %v2611_v62  ;;  %2442 = vmatmul.msk.f32.vlgmr.msra.gmra.mxu1 %vm156_vm2, %v2440_v55 }
 0x3c2   :  { %v1725_v4 = vsel %vm476_vm13, %v2611_v62, %v1723_v0  ;;  %1746 = vmatpush.msrb.mxu0 %v1724_v2 }
 0x3c3   :  { %1766 = vmatpush.msrb.mxu1 %v1725_v4 }
 0x3c4   :  { %2444 = vmatmul.msk.f32.vlgmr.msra.gmra.mxu2 %vm156_vm2, %v2443_v1 }
 0x3c5   :  { %2447 = vmatmul.msk.f32.vlgmr.msrb.gmra.mxu0 %vm156_vm2, %v2446_v3 }
 0x3c9   :  { %2445 = vmatmul.msk.f32.vlgmr.msra.gmra.mxu3 %vm156_vm2, %v2443_v1  ;;  %2448 = vmatmul.msk.f32.vlgmr.msrb.gmra.mxu1 %vm156_vm2, %v2446_v3 }
 0x409   :  { %v889_v8 = vpop.f32.mrf.mxu0 }
 0x40a   :  { %v912_v19 = vadd.f32 %v889_v8, %v852_v15 }
 0x40c   :  { %v971_v23 = vadd.f32 %v948_v16, %v912_v19 }
 0x40e   :  { %v909_v10 = vpop.f32.mrf.mxu1 }
 0x40f   :  { %v913_v22 = vadd.f32 %v909_v10, %v853_v18 }
 0x411   :  { %v1008_v11 = vpop.f32.mrf.mxu0  ;;  %v972_v26 = vadd.f32 %v968_v20, %v913_v22 }
 0x412   :  { %v1031_v27 = vadd.f32 %v1008_v11, %v971_v23 }
 0x416   :  { %v1028_v13 = vpop.f32.mrf.mxu1 }
 0x417   :  { %v1032_v29 = vadd.f32 %v1028_v13, %v972_v26 }
 0x41a   :  { %v1126_v17 = vpop.f32.mrf.mxu0 }
 0x41e   :  { %v1146_v21 = vpop.f32.mrf.mxu1 }
 0x41f   :  { %v1067_v24 = vpop.f32.mrf.mxu2 }
 0x420   :  { %v1090_v30 = vadd.f32 %v1067_v24, %v1031_v27 }
 0x422   :  { %v1319_v25 = vpop.f32.mrf.mxu0  ;;  %v1149_v36 = vadd.f32 %v1126_v17, %v1090_v30  ;;  %v2449_v30 = vld [vmem:[%s3193_s3 + $0x4] sm:$0xf] }
 0x424   :  { %v1087_v28 = vpop.f32.mrf.mxu3 }
 0x425   :  { %v1091_v34 = vadd.f32 %v1087_v28, %v1032_v29 }
 0x426   :  { %v1339_v33 = vpop.f32.mrf.mxu1 }
 0x427   :  { %v1185_v35 = vpop.f32.mrf.mxu2  ;;  %v1150_v39 = vadd.f32 %v1146_v21, %v1091_v34 }
 0x428   :  { %v1208_v38 = vadd.f32 %v1185_v35, %v1149_v36 }
 0x42a   :  { %v1406_v37 = vpop.f32.mrf.mxu0  ;;  %v1212_v43 = vmul.f32 0.1, %v1208_v38  ;;  %vm1210_vm15 = vcmp.ge.f32.partialorder %v1208_v38, 0.0 }
 0x42c   :  { %v1205_v40 = vpop.f32.mrf.mxu3  ;;  %v1214_v53 = vsel %vm1210_vm15, %v1208_v38, %v1212_v43 }
 0x42d   :  { %v1209_v41 = vadd.f32 %v1205_v40, %v1150_v39 }
 0x42e   :  { %v1426_v42 = vpop.f32.mrf.mxu1 }
 0x42f   :  { %vm1211_vm2 = vcmp.ge.f32.partialorder %v1209_v41, 0.0  ;;  %v1213_v49 = vmul.f32 0.1, %v1209_v41  ;;  %v1362_v50 = vpop.f32.mrf.mxu2 }
 0x430   :  { %v1363_v57 = vadd.f32 %v1362_v50, %v1319_v25 }
 0x431   :  { %v1215_v51 = vsel %vm1211_vm2, %v1209_v41, %v1213_v49 }
 0x432   :  { %v1218_v52 = vrot.slane %v1215_v51, 4  ;;  %v1521_v54 = vpop.f32.mrf.mxu0  ;;  %v1429_v61 = vadd.f32 %v1406_v37, %v1363_v57 }
 0x434   :  { %v1219_v55 = vsel %vm78_vm0, %v1214_v53, %v1218_v52  ;;  %v1382_v56 = vpop.f32.mrf.mxu3 }
 0x435   :  { %1221 = vst [vmem:[%s3194_s4] sm:$0xff] %v1219_v55  ;;  %v1383_v62 = vadd.f32 %v1382_v56, %v1339_v33 }
 0x436   :  { %v1541_v59 = vpop.f32.mrf.mxu1 }
 0x437   :  { %v1465_v58 = vpop.f32.mrf.mxu2  ;;  %v1430_v2 = vadd.f32 %v1426_v42, %v1383_v62 }
 0x438   :  { %v1488_v63 = vadd.f32 %v1465_v58, %v1429_v61  ;;  %v1834_v58 = vld [vmem:[%s3193_s3] sm:$0xf] }
 0x43a   :  { %v1636_v1 = vpop.f32.mrf.mxu0  ;;  %v1544_v4 = vadd.f32 %v1521_v54, %v1488_v63  ;;  %v2463_v63 = vld [vmem:[%s3193_s3 + $0xc] sm:$0xf] }
 0x43c   :  { %v1485_v0 = vpop.f32.mrf.mxu3 }
 0x43d   :  { %v1489_v5 = vadd.f32 %v1485_v0, %v1430_v2 }
 0x43e   :  { %v1656_v7 = vpop.f32.mrf.mxu1 }
 0x43f   :  { %v1580_v3 = vpop.f32.mrf.mxu2  ;;  %v1545_v8 = vadd.f32 %v1541_v59, %v1489_v5  ;;  %v2468_v59 = vld [vmem:[%s3193_s3 + $0x10] sm:$0xf] }
 0x440   :  { %v1603_v6 = vadd.f32 %v1580_v3, %v1544_v4  ;;  %v2478_v3 = vld [vmem:[%s3193_s3 + $0x18] sm:$0xf] }
 0x442   :  { %v1659_v9 = vadd.f32 %v1636_v1, %v1603_v6  ;;  %v1748_v44 = vpop.f32.mrf.mxu0 }
 0x444   :  { %v1600_v45 = vpop.f32.mrf.mxu3 }
 0x445   :  { %v1604_v10 = vadd.f32 %v1600_v45, %v1545_v8  ;;  %v2473_v8 = vld [vmem:[%s3193_s3 + $0x14] sm:$0xf] }
 0x446   :  { %v1768_v17 = vpop.f32.mrf.mxu1 }
 0x447   :  { %v1692_v11 = vpop.f32.mrf.mxu2  ;;  %v1660_v14 = vadd.f32 %v1656_v7, %v1604_v10 }
 0x448   :  { %v1715_v12 = vadd.f32 %v1692_v11, %v1659_v9 }
 0x44a   :  { %v1771_v13 = vadd.f32 %v1748_v44, %v1715_v12 }
 0x44c   :  { %v1775_v15 = vmul.f32 0.1, %v1771_v13  ;;  %vm1773_vm2 = vcmp.ge.f32.partialorder %v1771_v13, 0.0  ;;  %v1712_v16 = vpop.f32.mrf.mxu3 }
 0x44d   :  { %v1716_v18 = vadd.f32 %v1712_v16, %v1660_v14 }
 0x44e   :  { %v1777_v19 = vsel %vm1773_vm2, %v1771_v13, %v1775_v15  ;;  %v2488_v13 = vld [vmem:[%s3193_s3 + $0x20] sm:$0xf] }
 0x44f   :  { %1784 = vrot.lane.b32.xlu0 %v1777_v19, %s2614_s23  ;;  %1780 = vrot.lane.b32.xlu2 %v1777_v19, %s2612_s21  ;;  %v1772_v20 = vadd.f32 %v1768_v17, %v1716_v18  ;;  %v2483_v19 = vld [vmem:[%s3193_s3 + $0x1c] sm:$0xf] }
 0x451   :  { %v1776_v21 = vmul.f32 0.1, %v1772_v20  ;;  %vm1774_vm15 = vcmp.ge.f32.partialorder %v1772_v20, 0.0 }
 0x453   :  { %v1778_v22 = vsel %vm1774_vm15, %v1772_v20, %v1776_v21 }
 0x454   :  { %1786 = vrot.lane.b32.xlu1 %v1778_v22, %s2614_s23 }
 0x457   :  { %1791 = vrot.lane.b32.xlu2 %v1778_v22, %s2613_s22 }
 0x4a9   :  { %v1781_v23 = vpop.permute.xlu2 %1780 }
 0x4b1   :  { %v1792_v26 = vpop.permute.xlu2 %1791 }
 0x4c1   :  { %v1785_v24 = vpop.permute.xlu0 %1784 }
 0x4c2   :  { %v3057_v25 = vsel %vm90_vm1, %v1781_v23, %v1785_v24 }
 0x4c3   :  { %1801 = vrot.lane.b32.xlu0 %v3057_v25, %s2617_s25  ;;  %2450 = vmatpush.msk.msrb.mxu2 %vm78_vm0, %v3057_v25 }
 0x4c4   :  { %2451 = vmatmul.msk.f32.vlgmr.msrb.gmra.mxu2 %vm704_vm14, %v2449_v30 }
 0x4c6   :  { %v1787_v27 = vpop.permute.xlu1 %1786 }
 0x4c7   :  { %v1788_v28 = vsel %vm90_vm1, %v1785_v24, %v1787_v27  ;;  %v1795_v29 = vsel %vm90_vm1, %v1787_v27, %v1792_v26 }
 0x4c8   :  { %1805 = vrot.lane.b32.xlu2 %v1795_v29, %s2617_s25  ;;  %1803 = vrot.lane.b32.xlu1 %v1788_v28, %s2617_s25 }
 0x4c9   :  { %2452 = vmatpush.msk.msrb.mxu3 %vm78_vm0, %v1788_v28 }
 0x4ca   :  { %2453 = vmatmul.msk.f32.vlgmr.msrb.gmra.mxu3 %vm704_vm14, %v2449_v30 }
 0x4cb   :  { %1815 = vrot.lane.b32.xlu0 %v1788_v28, %s2616_s24 }
 0x4d0   :  { %1824 = vrot.lane.b32.xlu2 %v3057_v25, %s2618_s26  ;;  %1817 = vrot.lane.b32.xlu1 %v1795_v29, %s2616_s24 }
 0x4d3   :  { %1797 = vrot.lane.b32.xlu0 %v1795_v29, %s2615_s0 }
 0x4d8   :  { %2046 = vrot.lane.b32.xlu2 %v1788_v28, %s2612_s21  ;;  %1813 = vrot.lane.b32.xlu1 %v3057_v25, %s2616_s24 }
 0x4db   :  { %2048 = vrot.lane.b32.xlu0 %v1795_v29, %s2612_s21 }
 0x4e0   :  { %2044 = vrot.lane.b32.xlu1 %v3057_v25, %s2612_s21 }
 0x522   :  { %v1806_v34 = vpop.permute.xlu2 %1805 }
 0x52a   :  { %v1825_v37 = vpop.permute.xlu2 %1824 }
 0x532   :  { %v2047_v54 = vpop.permute.xlu2 %2046 }
 0x535   :  { %v1802_v33 = vpop.permute.xlu0 %1801 }
 0x53a   :  { %v1804_v35 = vpop.permute.xlu1 %1803 }
 0x53b   :  { %v1807_v39 = vsel %vm111_vm6, %v1802_v33, %v1804_v35  ;;  %v1808_v40 = vsel %vm111_vm6, %v1804_v35, %v1806_v34 }
 0x53d   :  { %v1816_v36 = vpop.permute.xlu0 %1815 }
 0x542   :  { %v1818_v38 = vpop.permute.xlu1 %1817 }
 0x543   :  { %v1820_v41 = vsel %vm124_vm4, %v1816_v36, %v1818_v38  ;;  %v1827_v42 = vsel %vm133_vm7, %v1818_v38, %v1825_v37 }
 0x544   :  { %v1832_v43 = vsel %vm2708_vm10, %v1807_v39, %v1820_v41  ;;  %v1830_v49 = vsel %vm2700_vm8, %v1827_v42, %v1808_v40  ;;  %v1829_v50 = vsel %vm2704_vm9, %v1820_v41, %v1807_v39  ;;  %v1833_v57 = vsel %vm2727_vm12, %v1808_v40, %v1827_v42 }
 0x545   :  { %v1798_v51 = vpop.permute.xlu0 %1797  ;;  %1990 = vrot.lane.b32.xlu0 %v1830_v49, %s2612_s21  ;;  %1988 = vrot.lane.b32.xlu2 %v1829_v50, %s2612_s21 }
 0x546   :  { %2456 = vmatpush.msk.msra.mxu1 %vm78_vm0, %v1829_v50  ;;  %2461 = vmatpush.msk.msra.mxu3 %vm78_vm0, %v1832_v43  ;;  %v1812_v53 = vsel %vm111_vm6, %v1798_v51, %v1802_v33 }
 0x547   :  { %2462 = vmatmul.msk.f32.vlgmr.msra.gmra.mxu3 %vm704_vm14, %v2458_v60  ;;  %2457 = vmatmul.msk.f32.vlgmr.msra.gmra.mxu1 %vm704_vm14, %v1834_v58  ;;  %v1860_v26 = vpop.f32.mrf.mxu2 }
 0x54a   :  { %v1814_v52 = vpop.permute.xlu1 %1813 }
 0x54b   :  { %v1819_v48 = vsel %vm124_vm4, %v1814_v52, %v1816_v36 }
 0x54c   :  { %v1831_v46 = vsel %vm2686_vm5, %v1812_v53, %v1819_v48  ;;  %v1828_v47 = vsel %vm2682_vm3, %v1819_v48, %v1812_v53 }
 0x54d   :  { %v2049_v55 = vpop.permute.xlu0 %2048  ;;  %2165 = vrot.lane.b32.xlu0 %v1830_v49, %s2619_s29  ;;  %2163 = vrot.lane.b32.xlu2 %v1829_v50, %s2619_s29 }
 0x54e   :  { %v2051_v56 = vsel %vm301_vm11, %v2047_v54, %v2049_v55  ;;  %2459 = vmatpush.msk.msra.mxu2 %vm78_vm0, %v1831_v46  ;;  %1986 = vrot.lane.b32.xlu1 %v1828_v47, %s2612_s21 }
 0x54f   :  { %2471 = vmatpush.msk.msrb.mxu3 %vm78_vm0, %v2051_v56  ;;  %2454 = vmatpush.msk.msra.mxu0 %vm78_vm0, %v1828_v47 }
 0x550   :  { %2460 = vmatmul.msk.f32.vlgmr.msra.gmra.mxu2 %vm704_vm14, %v2458_v60  ;;  %2455 = vmatmul.msk.f32.vlgmr.msra.gmra.mxu0 %vm704_vm14, %v1834_v58 }
 0x551   :  { %2472 = vmatmul.msk.f32.vlgmr.msrb.gmra.mxu3 %vm704_vm14, %v2468_v59 }
 0x552   :  { %v2045_v32 = vpop.permute.xlu1 %2044 }
 0x553   :  { %v2050_v31 = vsel %vm301_vm11, %v2045_v32, %v2047_v54 }
 0x554   :  { %2469 = vmatpush.msk.msrb.mxu2 %vm78_vm0, %v2050_v31 }
 0x555   :  { %2107 = vrot.lane.b32.xlu0 %v1833_v57, %s2612_s21  ;;  %2105 = vrot.lane.b32.xlu2 %v1832_v43, %s2612_s21 }
 0x556   :  { %2161 = vrot.lane.b32.xlu1 %v1828_v47, %s2619_s29 }
 0x558   :  { %2470 = vmatmul.msk.f32.vlgmr.msrb.gmra.mxu2 %vm704_vm14, %v2468_v59 }
 0x55d   :  { %2281 = vrot.lane.b32.xlu0 %v1833_v57, %s2619_s29  ;;  %2279 = vrot.lane.b32.xlu2 %v1832_v43, %s2619_s29 }
 0x55e   :  { %2103 = vrot.lane.b32.xlu1 %v1831_v46, %s2612_s21 }
 0x565   :  { %2223 = vrot.lane.b32.xlu0 %v1795_v29, %s2619_s29  ;;  %2221 = vrot.lane.b32.xlu2 %v1788_v28, %s2619_s29 }
 0x566   :  { %2277 = vrot.lane.b32.xlu1 %v1831_v46, %s2619_s29 }
 0x56e   :  { %2219 = vrot.lane.b32.xlu1 %v3057_v25, %s2619_s29  ;;  %v1880_v25 = vpop.f32.mrf.mxu3 }
 0x59f   :  { %v1989_v61 = vpop.permute.xlu2 %1988 }
 0x5a7   :  { %v2164_v1 = vpop.permute.xlu2 %2163 }
 0x5af   :  { %v2106_v7 = vpop.permute.xlu2 %2105 }
 0x5b7   :  { %v1991_v62 = vpop.permute.xlu0 %1990  ;;  %v2280_v44 = vpop.permute.xlu2 %2279 }
 0x5b8   :  { %v1993_v0 = vsel %vm301_vm11, %v1989_v61, %v1991_v62 }
 0x5b9   :  { %2466 = vmatpush.msk.msrb.mxu1 %vm78_vm0, %v1993_v0 }
 0x5ba   :  { %2467 = vmatmul.msk.f32.vlgmr.msrb.gmra.mxu1 %vm704_vm14, %v2463_v63 }
 0x5bf   :  { %v2166_v2 = vpop.permute.xlu0 %2165  ;;  %v2222_v17 = vpop.permute.xlu2 %2221 }
 0x5c0   :  { %v2168_v4 = vsel %vm476_vm13, %v2164_v1, %v2166_v2  ;;  %v1987_v5 = vpop.permute.xlu1 %1986 }
 0x5c1   :  { %v1992_v6 = vsel %vm301_vm11, %v1987_v5, %v1989_v61  ;;  %2481 = vmatpush.msk.msra.mxu3 %vm78_vm0, %v2168_v4 }
 0x5c2   :  { %2464 = vmatpush.msk.msrb.mxu0 %vm78_vm0, %v1992_v6  ;;  %2482 = vmatmul.msk.f32.vlgmr.msra.gmra.mxu3 %vm704_vm14, %v2478_v3 }
 0x5c3   :  { %2465 = vmatmul.msk.f32.vlgmr.msrb.gmra.mxu0 %vm704_vm14, %v2463_v63 }
 0x5c4   :  { %v1929_v27 = vpop.f32.mrf.mxu1 }
 0x5c5   :  { %v1930_v29 = vadd.f32 %v1929_v27, %v1880_v25 }
 0x5c7   :  { %v2108_v45 = vpop.permute.xlu0 %2107 }
 0x5c8   :  { %v2110_v9 = vsel %vm301_vm11, %v2106_v7, %v2108_v45  ;;  %v2162_v10 = vpop.permute.xlu1 %2161 }
 0x5c9   :  { %v2167_v11 = vsel %vm476_vm13, %v2162_v10, %v2164_v1  ;;  %2476 = vmatpush.msk.msra.mxu1 %vm78_vm0, %v2110_v9 }
 0x5ca   :  { %2479 = vmatpush.msk.msra.mxu2 %vm78_vm0, %v2167_v11  ;;  %2477 = vmatmul.msk.f32.vlgmr.msra.gmra.mxu1 %vm704_vm14, %v2473_v8  ;;  %v1979_v28 = vpop.f32.mrf.mxu3 }
 0x5cb   :  { %2480 = vmatmul.msk.f32.vlgmr.msra.gmra.mxu2 %vm704_vm14, %v2478_v3  ;;  %v1983_v35 = vadd.f32 %v1979_v28, %v1930_v29 }
 0x5cd   :  { %v1909_v34 = vpop.f32.mrf.mxu0 }
 0x5ce   :  { %v1910_v38 = vadd.f32 %v1909_v34, %v1860_v26 }
 0x5cf   :  { %v2282_v12 = vpop.permute.xlu0 %2281 }
 0x5d0   :  { %v2284_v14 = vsel %vm476_vm13, %v2280_v44, %v2282_v12  ;;  %v2104_v15 = vpop.permute.xlu1 %2103 }
 0x5d1   :  { %v2109_v16 = vsel %vm301_vm11, %v2104_v15, %v2106_v7  ;;  %2491 = vmatpush.msk.msrb.mxu3 %vm78_vm0, %v2284_v14 }
 0x5d2   :  { %2474 = vmatpush.msk.msra.mxu0 %vm78_vm0, %v2109_v16  ;;  %2492 = vmatmul.msk.f32.vlgmr.msrb.gmra.mxu3 %vm704_vm14, %v2488_v13 }
 0x5d3   :  { %2475 = vmatmul.msk.f32.vlgmr.msra.gmra.mxu0 %vm704_vm14, %v2473_v8  ;;  %v1959_v30 = vpop.f32.mrf.mxu2 }
 0x5d4   :  { %v2096_v36 = vpop.f32.mrf.mxu3  ;;  %v1982_v49 = vadd.f32 %v1959_v30, %v1910_v38 }
 0x5d7   :  { %v2224_v18 = vpop.permute.xlu0 %2223 }
 0x5d8   :  { %v2226_v20 = vsel %vm476_vm13, %v2222_v17, %v2224_v18  ;;  %v2278_v21 = vpop.permute.xlu1 %2277 }
 0x5d9   :  { %v2283_v22 = vsel %vm476_vm13, %v2278_v21, %v2280_v44  ;;  %2486 = vmatpush.msk.msrb.mxu1 %vm78_vm0, %v2226_v20 }
 0x5da   :  { %2489 = vmatpush.msk.msrb.mxu2 %vm78_vm0, %v2283_v22  ;;  %2487 = vmatmul.msk.f32.vlgmr.msrb.gmra.mxu1 %vm704_vm14, %v2483_v19 }
 0x5db   :  { %2490 = vmatmul.msk.f32.vlgmr.msrb.gmra.mxu2 %vm704_vm14, %v2488_v13  ;;  %v2076_v40 = vpop.f32.mrf.mxu2 }
 0x5e0   :  { %v2220_v23 = vpop.permute.xlu1 %2219 }
 0x5e1   :  { %v2225_v24 = vsel %vm476_vm13, %v2220_v23, %v2222_v17 }
 0x5e2   :  { %2484 = vmatpush.msk.msrb.mxu0 %vm78_vm0, %v2225_v24 }
 0x5e3   :  { %2485 = vmatmul.msk.f32.vlgmr.msrb.gmra.mxu0 %vm704_vm14, %v2483_v19 }
 0x637   :  { %v2038_v33 = vpop.f32.mrf.mxu1 }
 0x638   :  { %v2042_v37 = vadd.f32 %v2038_v33, %v1983_v35 }
 0x63a   :  { %v2100_v39 = vadd.f32 %v2096_v36, %v2042_v37 }
 0x640   :  { %v2018_v42 = vpop.f32.mrf.mxu0 }
 0x641   :  { %v2041_v51 = vadd.f32 %v2018_v42, %v1982_v49 }
 0x643   :  { %v2099_v55 = vadd.f32 %v2076_v40, %v2041_v51 }
 0x645   :  { %v2213_v43 = vpop.f32.mrf.mxu3 }
 0x647   :  { %v2155_v41 = vpop.f32.mrf.mxu1 }
 0x648   :  { %v2159_v50 = vadd.f32 %v2155_v41, %v2100_v39 }
 0x64a   :  { %v2217_v52 = vadd.f32 %v2213_v43, %v2159_v50 }
 0x64e   :  { %v2193_v53 = vpop.f32.mrf.mxu2 }
 0x650   :  { %v2135_v46 = vpop.f32.mrf.mxu0 }
 0x651   :  { %v2158_v56 = vadd.f32 %v2135_v46, %v2099_v55 }
 0x653   :  { %v2216_v31 = vadd.f32 %v2193_v53, %v2158_v56 }
 0x655   :  { %v2329_v54 = vpop.f32.mrf.mxu3 }
 0x657   :  { %v2271_v48 = vpop.f32.mrf.mxu1 }
 0x658   :  { %v2275_v47 = vadd.f32 %v2271_v48, %v2217_v52 }
 0x65a   :  { %v2333_v32 = vadd.f32 %v2329_v54, %v2275_v47 }
 0x65c   :  { %v2337_v57 = vmul.f32 0.1, %v2333_v32  ;;  %vm2335_vm1 = vcmp.ge.f32.partialorder %v2333_v32, 0.0 }
 0x65e   :  { %v2309_v58 = vpop.f32.mrf.mxu2  ;;  %v2339_v61 = vsel %vm2335_vm1, %v2333_v32, %v2337_v57 }
 0x65f   :  { %v2342_v0 = vrot.slane %v2339_v61, 4 }
 0x660   :  { %v2251_v60 = vpop.f32.mrf.mxu0 }
 0x661   :  { %v2274_v59 = vadd.f32 %v2251_v60, %v2216_v31 }
 0x663   :  { %v2332_v62 = vadd.f32 %v2309_v58, %v2274_v59 }
 0x665   :  { %vm2334_vm3 = vcmp.ge.f32.partialorder %v2332_v62, 0.0  ;;  %v2336_v63 = vmul.f32 0.1, %v2332_v62 }
 0x667   :  { %v2338_v1 = vsel %vm2334_vm3, %v2332_v62, %v2336_v63 }
 0x668   :  { %v2343_v2 = vsel %vm78_vm0, %v2338_v1, %v2342_v0 }
 0x669   :  { %2493 = vst [vmem:[%s3194_s4 + $0x8] sm:$0xff] %v2343_v2 }

</bundles_post_ra>
